<compile_context>
chip_gen: v7x
topology: tpu7x:2x2x1
jax: 0.10.0
libtpu: 0.0.40
codegen_flags: <defaults>
</compile_context>

<pallas_src>
from functools import partial

import jax
import jax.numpy as jnp
from jax import lax
from jax.experimental import pallas as pl
from jax.experimental.pallas import tpu as pltpu

LN_EPS = 1e-6


def _layernorm(x, gamma, beta):
    mu = jnp.mean(x, axis=-1, keepdims=True)
    var = jnp.mean((x - mu) ** 2, axis=-1, keepdims=True)
    return (x - mu) * lax.rsqrt(var + LN_EPS) * gamma + beta


def encoder_layer_kernel(x_ref, wqkv_ref, bqkv_ref, wo_ref, bo_ref,
                         ln1g_ref, ln1b_ref,
                         w1_ref, b1_ref, w2_ref, b2_ref,
                         ln2g_ref, ln2b_ref,
                         *refs, n_head, dh_tile, return_attn):
    if return_attn:
        out_ref, attn_ref, q_scr, k_scr, v_scr, ctx_scr, ffn_acc = refs
    else:
        out_ref, q_scr, k_scr, v_scr, ctx_scr, ffn_acc = refs
        attn_ref = None

    _, S, D = x_ref.shape
    tq = out_ref.shape[1]
    dk = D // n_head
    Dh = w1_ref.shape[1]
    n_ffn_chunks = Dh // dh_tile
    scale = 1.0 / float(dk) ** 0.5
    bf16, f32 = jnp.bfloat16, jnp.float32
    qi = pl.program_id(1)

    # ---- K/V projection: once per batch element, persisted in bf16 VMEM ------
    @pl.when(qi == 0)
    def _():
        kv = jnp.dot(x_ref[0].astype(bf16), wqkv_ref[:, D:3 * D],
                     preferred_element_type=f32) + bqkv_ref[:, D:3 * D]
        for h in range(n_head):                       # static unroll: [S, dk] slabs
            k_scr[h] = kv[:, h * dk:(h + 1) * dk].astype(bf16)
            v_scr[h] = kv[:, D + h * dk:D + (h + 1) * dk].astype(bf16)

    # ---- query-row tile of the input (residual path stays f32) ---------------
    if tq == S:
        x_tile = x_ref[0]                                        # [tq, D]
    else:
        q_start = pl.multiple_of(qi * tq, tq)
        x_tile = x_ref[0, pl.ds(q_start, tq), :]

    # ---- Q projection for this tile, pre-scaled, split to [H, tq, dk] scratch -
    q = (jnp.dot(x_tile.astype(bf16), wqkv_ref[:, 0:D],
                 preferred_element_type=f32) + bqkv_ref[:, 0:D]) * scale
    for h in range(n_head):
        q_scr[h] = q[:, h * dk:(h + 1) * dk].astype(bf16)

    # ---- head-batched scores / softmax / context ------------------------------
    s = jnp.einsum('hqd,hkd->hqk', q_scr[...], k_scr[...],
                   preferred_element_type=f32)                   # [H, tq, S]
    # TODO(synk): optional attention mask (masked_fill -1e9) not wired in; the
    #             reference forward is only exercised with mask=None.
    m = jnp.max(s, axis=-1, keepdims=True)
    e = jnp.exp(s - m)
    p = e / jnp.sum(e, axis=-1, keepdims=True)        # exact division (returned output)
    if return_attn:
        attn_ref[0] = p.astype(attn_ref.dtype)
    ctx = jnp.einsum('hqk,hkd->hqd', p.astype(bf16), v_scr[...],
                     preferred_element_type=f32)                 # [H, tq, dk]
    # Merge heads into a lane-major [tq, D] bf16 buffer (dense stores when dk>=128).
    for h in range(n_head):
        ctx_scr[:, h * dk:(h + 1) * dk] = ctx[h].astype(bf16)

    # ---- output projection + residual + LayerNorm (dropout = identity, eval) --
    proj = jnp.dot(ctx_scr[...], wo_ref[...],
                   preferred_element_type=f32) + bo_ref[...]
    y1 = _layernorm(proj + x_tile, ln1g_ref[...], ln1b_ref[...])

    # ---- position-wise FFN: hidden dim tiled, f32 VMEM accumulator ------------
    y1_b = y1.astype(bf16)
    ffn_acc[...] = jnp.zeros_like(ffn_acc)
    for c in range(n_ffn_chunks):                                # static unroll
        lo = c * dh_tile
        h1 = jnp.maximum(
            jnp.dot(y1_b, w1_ref[:, lo:lo + dh_tile],
                    preferred_element_type=f32) + b1_ref[:, lo:lo + dh_tile], 0.0)
        ffn_acc[...] += jnp.dot(h1.astype(bf16), w2_ref[lo:lo + dh_tile, :],
                                preferred_element_type=f32)
    h2 = ffn_acc[...] + b2_ref[...]
    out_ref[0] = _layernorm(h2 + y1, ln2g_ref[...], ln2b_ref[...]).astype(out_ref.dtype)


def _pick_tile(n, pref):
    """Largest power-of-two-ish tile <= pref that divides n (falls back to n)."""
    if n <= pref:
        return n
    t = pref
    while t > 1:
        if n % t == 0:
            return t
        t //= 2
    return n


def encoder_layer(x, params, n_head, *, return_attn=True, attn_dtype=jnp.float32):
    B, S, D = x.shape
    Dh = params["w1"].shape[1]
    assert D % n_head == 0, "d_model must be divisible by n_head"
    dk = D // n_head

    # ---- per-generation sizing (v7x has 64 MiB VMEM per TC, v5e/v6e 128 MiB) --
    try:
        vmem_cap = int(pltpu.get_tpu_info().vmem_capacity_bytes)
    except Exception:
        vmem_cap = 128 * 1024 * 1024
    tq_pref = 256 if vmem_cap > 64 * 1024 * 1024 else 128
    tq = _pick_tile(S, tq_pref)          # query-tile rows per grid step
    dh_tile = _pick_tile(Dh, 512)        # FFN hidden-dim tile
    nq = S // tq
    vmem_limit = min(vmem_cap * 3 // 4, 96 * 1024 * 1024)

    bf16 = jnp.bfloat16
    # Fuse q/k/v weights into one [D, 3D] matrix (single weight DMA stream).
    wqkv = jnp.concatenate(
        [params["wq"], params["wk"], params["wv"]], axis=1).astype(bf16)
    bqkv = jnp.concatenate([params["bq"], params["bk"], params["bv"]], axis=1)
    wo = params["wo"].astype(bf16)
    w1 = params["w1"].astype(bf16)
    w2 = params["w2"].astype(bf16)

    def rep(shape):
        # Grid-invariant block: constant index_map => DMA'd once, kept resident.
        return pl.BlockSpec(shape, lambda b, qi: (0,) * len(shape))

    in_specs = [
        pl.BlockSpec((1, S, D), lambda b, qi: (b, 0, 0)),  # x (full seq for K/V)
        rep((D, 3 * D)), rep((1, 3 * D)),                  # wqkv, bqkv
        rep((D, D)), rep((1, D)),                          # wo, bo
        rep((1, D)), rep((1, D)),                          # ln1 gamma, beta
        rep((D, Dh)), rep((1, Dh)),                        # w1, b1
        rep((Dh, D)), rep((1, D)),                         # w2, b2
        rep((1, D)), rep((1, D)),                          # ln2 gamma, beta
    ]

    if return_attn:
        out_specs = (
            pl.BlockSpec((1, tq, D), lambda b, qi: (b, qi, 0)),
            pl.BlockSpec((1, n_head, tq, S), lambda b, qi: (b, 0, qi, 0)),
        )
        out_shape = (
            jax.ShapeDtypeStruct((B, S, D), jnp.float32),
            jax.ShapeDtypeStruct((B, n_head, S, S), attn_dtype),
        )
    else:
        out_specs = pl.BlockSpec((1, tq, D), lambda b, qi: (b, qi, 0))
        out_shape = jax.ShapeDtypeStruct((B, S, D), jnp.float32)

    scratch_shapes = [
        pltpu.VMEM((n_head, tq, dk), bf16),   # q, per head
        pltpu.VMEM((n_head, S, dk), bf16),    # K, persistent across query tiles
        pltpu.VMEM((n_head, S, dk), bf16),    # V, persistent across query tiles
        pltpu.VMEM((tq, D), bf16),            # merged-head context
        pltpu.VMEM((tq, D), jnp.float32),     # FFN accumulator
    ]

    flops = (2 * B * S * D * (3 * D)          # QKV projections
             + 4 * B * S * S * D              # scores + context (all heads)
             + 2 * B * S * D * D              # output projection
             + 4 * B * S * D * Dh)            # FFN (w1 + w2)
    attn_bytes = (B * n_head * S * S * jnp.dtype(attn_dtype).itemsize
                  if return_attn else 0)
    bytes_accessed = (2 * B * S * D * 4                       # x in + out (f32)
                      + attn_bytes
                      + 2 * (3 * D * D + D * D + 2 * D * Dh)  # bf16 weights
                      + 4 * (3 * D + 5 * D + Dh))             # biases + LN params
    cost = pl.CostEstimate(flops=int(flops),
                           transcendentals=int(B * n_head * S * S),
                           bytes_accessed=int(bytes_accessed))

    return pl.pallas_call(
        partial(encoder_layer_kernel, n_head=n_head, dh_tile=dh_tile,
                return_attn=return_attn),
        out_shape=out_shape,
        grid_spec=pltpu.PrefetchScalarGridSpec(
            num_scalar_prefetch=0,
            grid=(B, nq),
            in_specs=in_specs,
            out_specs=out_specs,
            scratch_shapes=scratch_shapes,
        ),
        compiler_params=pltpu.CompilerParams(
            # qi axis is "arbitrary": the pl.when(qi==0) K/V hoist needs
            # sequential order within a batch element; B stays "parallel".
            dimension_semantics=("parallel", "arbitrary"),
            vmem_limit_bytes=int(vmem_limit),
        ),
        cost_estimate=cost,
    )(x, wqkv, bqkv, wo, params["bo"],
      params["ln1_g"], params["ln1_b"],
      w1, params["b1"], w2, params["b2"],
      params["ln2_g"], params["ln2_b"])


def init_params(key, d_model, d_hid):
    ks = jax.random.split(key, 8)
    s = 0.02
    return {
        "wq": s * jax.random.normal(ks[0], (d_model, d_model), jnp.float32),
        "bq": jnp.zeros((1, d_model), jnp.float32),
        "wk": s * jax.random.normal(ks[1], (d_model, d_model), jnp.float32),
        "bk": jnp.zeros((1, d_model), jnp.float32),
        "wv": s * jax.random.normal(ks[2], (d_model, d_model), jnp.float32),
        "bv": jnp.zeros((1, d_model), jnp.float32),
        "wo": s * jax.random.normal(ks[3], (d_model, d_model), jnp.float32),
        "bo": jnp.zeros((1, d_model), jnp.float32),
        "ln1_g": jnp.ones((1, d_model), jnp.float32),
        "ln1_b": jnp.zeros((1, d_model), jnp.float32),
        "w1": s * jax.random.normal(ks[4], (d_model, d_hid), jnp.float32),
        "b1": jnp.zeros((1, d_hid), jnp.float32),
        "w2": s * jax.random.normal(ks[5], (d_hid, d_model), jnp.float32),
        "b2": jnp.zeros((1, d_model), jnp.float32),
        "ln2_g": jnp.ones((1, d_model), jnp.float32),
        "ln2_b": jnp.zeros((1, d_model), jnp.float32),
    }


if __name__ == "__main__":
    B, S, D, H = 2, 8, 32, 4
    Dh = 4 * D

    key = jax.random.PRNGKey(0)
    kx, kp = jax.random.split(key)
    x = jax.random.normal(kx, (B, S, D), jnp.float32)
    params = init_params(kp, D, Dh)

    # Full module semantics: (enc_output, enc_slf_attn)
    enc_out, slf_attn = encoder_layer(x, params, n_head=H)
    jax.block_until_ready((enc_out, slf_attn))
    assert enc_out.shape == (B, S, D)
    assert slf_attn.shape == (B, H, S, S)
    assert jnp.allclose(jnp.sum(slf_attn, axis=-1), 1.0, atol=1e-3)

    # Perf path: skip the (B,H,S,S) attention writeback entirely.
    enc_only = encoder_layer(x, params, n_head=H, return_attn=False)
    jax.block_until_ready(enc_only)
    assert enc_only.shape == (B, S, D)
    assert jnp.allclose(enc_only, enc_out, atol=1e-2)

    print("KERNEL_OK")
</pallas_src>

<mosaic_0001>
module attributes {stable_mosaic.version = 11 : i64} {
  func.func @encoder_layer_kernel(%arg0: i32, %arg1: i32, %arg2: memref<1x8x32xf32, #tpu.memory_space<vmem>>, %arg3: memref<32x96xbf16, #tpu.memory_space<vmem>>, %arg4: memref<1x96xf32, #tpu.memory_space<vmem>>, %arg5: memref<32x32xbf16, #tpu.memory_space<vmem>>, %arg6: memref<1x32xf32, #tpu.memory_space<vmem>>, %arg7: memref<1x32xf32, #tpu.memory_space<vmem>>, %arg8: memref<1x32xf32, #tpu.memory_space<vmem>>, %arg9: memref<32x128xbf16, #tpu.memory_space<vmem>>, %arg10: memref<1x128xf32, #tpu.memory_space<vmem>>, %arg11: memref<128x32xbf16, #tpu.memory_space<vmem>>, %arg12: memref<1x32xf32, #tpu.memory_space<vmem>>, %arg13: memref<1x32xf32, #tpu.memory_space<vmem>>, %arg14: memref<1x32xf32, #tpu.memory_space<vmem>>, %arg15: memref<1x8x32xf32, #tpu.memory_space<vmem>>, %arg16: memref<1x4x8x8xf32, #tpu.memory_space<vmem>>, %arg17: memref<4x8x8xbf16, #tpu.memory_space<vmem>>, %arg18: memref<4x8x8xbf16, #tpu.memory_space<vmem>>, %arg19: memref<4x8x8xbf16, #tpu.memory_space<vmem>>, %arg20: memref<8x32xbf16, #tpu.memory_space<vmem>>, %arg21: memref<8x32xf32, #tpu.memory_space<vmem>>) attributes {dimension_semantics = [#tpu.dimension_semantics<parallel>, #tpu.dimension_semantics<arbitrary>], iteration_bounds = array<i64: 2, 1>, scalar_prefetch = 0 : i64, scratch_operands = 5 : i64, tpu.core_type = #tpu.core_type<tc>, window_params = [{transform_indices = @transform_0, window_bounds = array<i64: 1, 8, 32>}, {pipeline_mode = #tpu.pipeline_mode<synchronous>, transform_indices = @transform_1, window_bounds = array<i64: 32, 96>}, {pipeline_mode = #tpu.pipeline_mode<synchronous>, transform_indices = @transform_2, window_bounds = array<i64: 1, 96>}, {pipeline_mode = #tpu.pipeline_mode<synchronous>, transform_indices = @transform_3, window_bounds = array<i64: 32, 32>}, {pipeline_mode = #tpu.pipeline_mode<synchronous>, transform_indices = @transform_4, window_bounds = array<i64: 1, 32>}, {pipeline_mode = #tpu.pipeline_mode<synchronous>, transform_indices = @transform_5, window_bounds = array<i64: 1, 32>}, {pipeline_mode = #tpu.pipeline_mode<synchronous>, transform_indices = @transform_6, window_bounds = array<i64: 1, 32>}, {pipeline_mode = #tpu.pipeline_mode<synchronous>, transform_indices = @transform_7, window_bounds = array<i64: 32, 128>}, {pipeline_mode = #tpu.pipeline_mode<synchronous>, transform_indices = @transform_8, window_bounds = array<i64: 1, 128>}, {pipeline_mode = #tpu.pipeline_mode<synchronous>, transform_indices = @transform_9, window_bounds = array<i64: 128, 32>}, {pipeline_mode = #tpu.pipeline_mode<synchronous>, transform_indices = @transform_10, window_bounds = array<i64: 1, 32>}, {pipeline_mode = #tpu.pipeline_mode<synchronous>, transform_indices = @transform_11, window_bounds = array<i64: 1, 32>}, {pipeline_mode = #tpu.pipeline_mode<synchronous>, transform_indices = @transform_12, window_bounds = array<i64: 1, 32>}, {transform_indices = @transform_13, window_bounds = array<i64: 1, 8, 32>}, {transform_indices = @transform_14, window_bounds = array<i64: 1, 4, 8, 8>}]} {
    %c0_i32 = arith.constant 0 : i32
    %0 = arith.cmpi eq, %arg1, %c0_i32 : i32
    %1 = arith.extui %0 : i1 to i32
    %c0_i32_0 = arith.constant 0 : i32
    %2 = arith.cmpi ne, %1, %c0_i32_0 : i32
    scf.if %2 {
      %c0_87 = arith.constant 0 : index
      %c0_88 = arith.constant 0 : index
      %c0_89 = arith.constant 0 : index
      %146 = vector.load %arg2[%c0_87, %c0_88, %c0_89] : memref<1x8x32xf32, #tpu.memory_space<vmem>>, vector<1x8x32xf32>
      %147 = vector.shape_cast %146 : vector<1x8x32xf32> to vector<8x32xf32>
      %148 = arith.truncf %147 : vector<8x32xf32> to vector<8x32xbf16>
      %c0_90 = arith.constant 0 : index
      %c32 = arith.constant 32 : index
      %149 = vector.load %arg3[%c0_90, %c32] : memref<32x96xbf16, #tpu.memory_space<vmem>>, vector<32x64xbf16>
      %cst_91 = arith.constant dense<0.000000e+00> : vector<8x64xf32>
      %150 = tpu.matmul %148, %149, %cst_91 {dimension_numbers = #tpu.dot_dimension_numbers<[1], [0], [0], [1], [0, 0, 1, 1], [], []>} : vector<8x32xbf16>, vector<32x64xbf16>, vector<8x64xf32> -> vector<8x64xf32>
      %c0_92 = arith.constant 0 : index
      %c32_93 = arith.constant 32 : index
      %151 = vector.load %arg4[%c0_92, %c32_93] : memref<1x96xf32, #tpu.memory_space<vmem>>, vector<1x64xf32>
      %152 = vector.broadcast %151 : vector<1x64xf32> to vector<8x64xf32>
      %153 = arith.addf %150, %152 : vector<8x64xf32>
      %154 = vector.extract_strided_slice %153 {offsets = [0, 0], sizes = [8, 8], strides = [1, 1]} : vector<8x64xf32> to vector<8x8xf32>
      %155 = arith.truncf %154 : vector<8x8xf32> to vector<8x8xbf16>
      %c0_94 = arith.constant 0 : index
      %c0_95 = arith.constant 0 : index
      %c0_96 = arith.constant 0 : index
      %156 = vector.load %arg18[%c0_94, %c0_95, %c0_96] : memref<4x8x8xbf16, #tpu.memory_space<vmem>>, vector<1x8x8xbf16>
      %157 = vector.shape_cast %156 : vector<1x8x8xbf16> to vector<8x8xbf16>
      %158 = vector.shape_cast %155 : vector<8x8xbf16> to vector<1x8x8xbf16>
      tpu.vector_store %arg18[%c0_94, %c0_95, %c0_96], %158 {strides = array<i32>} : memref<4x8x8xbf16, #tpu.memory_space<vmem>>, vector<1x8x8xbf16>,
      %159 = vector.extract_strided_slice %153 {offsets = [0, 32], sizes = [8, 8], strides = [1, 1]} : vector<8x64xf32> to vector<8x8xf32>
      %160 = arith.truncf %159 : vector<8x8xf32> to vector<8x8xbf16>
      %c0_97 = arith.constant 0 : index
      %c0_98 = arith.constant 0 : index
      %c0_99 = arith.constant 0 : index
      %161 = vector.load %arg19[%c0_97, %c0_98, %c0_99] : memref<4x8x8xbf16, #tpu.memory_space<vmem>>, vector<1x8x8xbf16>
      %162 = vector.shape_cast %161 : vector<1x8x8xbf16> to vector<8x8xbf16>
      %163 = vector.shape_cast %160 : vector<8x8xbf16> to vector<1x8x8xbf16>
      tpu.vector_store %arg19[%c0_97, %c0_98, %c0_99], %163 {strides = array<i32>} : memref<4x8x8xbf16, #tpu.memory_space<vmem>>, vector<1x8x8xbf16>,
      %164 = vector.extract_strided_slice %153 {offsets = [0, 8], sizes = [8, 8], strides = [1, 1]} : vector<8x64xf32> to vector<8x8xf32>
      %165 = arith.truncf %164 : vector<8x8xf32> to vector<8x8xbf16>
      %c1_100 = arith.constant 1 : index
      %c0_101 = arith.constant 0 : index
      %c0_102 = arith.constant 0 : index
      %166 = vector.load %arg18[%c1_100, %c0_101, %c0_102] : memref<4x8x8xbf16, #tpu.memory_space<vmem>>, vector<1x8x8xbf16>
      %167 = vector.shape_cast %166 : vector<1x8x8xbf16> to vector<8x8xbf16>
      %168 = vector.shape_cast %165 : vector<8x8xbf16> to vector<1x8x8xbf16>
      tpu.vector_store %arg18[%c1_100, %c0_101, %c0_102], %168 {strides = array<i32>} : memref<4x8x8xbf16, #tpu.memory_space<vmem>>, vector<1x8x8xbf16>,
      %169 = vector.extract_strided_slice %153 {offsets = [0, 40], sizes = [8, 8], strides = [1, 1]} : vector<8x64xf32> to vector<8x8xf32>
      %170 = arith.truncf %169 : vector<8x8xf32> to vector<8x8xbf16>
      %c1_103 = arith.constant 1 : index
      %c0_104 = arith.constant 0 : index
      %c0_105 = arith.constant 0 : index
      %171 = vector.load %arg19[%c1_103, %c0_104, %c0_105] : memref<4x8x8xbf16, #tpu.memory_space<vmem>>, vector<1x8x8xbf16>
      %172 = vector.shape_cast %171 : vector<1x8x8xbf16> to vector<8x8xbf16>
      %173 = vector.shape_cast %170 : vector<8x8xbf16> to vector<1x8x8xbf16>
      tpu.vector_store %arg19[%c1_103, %c0_104, %c0_105], %173 {strides = array<i32>} : memref<4x8x8xbf16, #tpu.memory_space<vmem>>, vector<1x8x8xbf16>,
      %174 = vector.extract_strided_slice %153 {offsets = [0, 16], sizes = [8, 8], strides = [1, 1]} : vector<8x64xf32> to vector<8x8xf32>
      %175 = arith.truncf %174 : vector<8x8xf32> to vector<8x8xbf16>
      %c2_106 = arith.constant 2 : index
      %c0_107 = arith.constant 0 : index
      %c0_108 = arith.constant 0 : index
      %176 = vector.load %arg18[%c2_106, %c0_107, %c0_108] : memref<4x8x8xbf16, #tpu.memory_space<vmem>>, vector<1x8x8xbf16>
      %177 = vector.shape_cast %176 : vector<1x8x8xbf16> to vector<8x8xbf16>
      %178 = vector.shape_cast %175 : vector<8x8xbf16> to vector<1x8x8xbf16>
      tpu.vector_store %arg18[%c2_106, %c0_107, %c0_108], %178 {strides = array<i32>} : memref<4x8x8xbf16, #tpu.memory_space<vmem>>, vector<1x8x8xbf16>,
      %179 = vector.extract_strided_slice %153 {offsets = [0, 48], sizes = [8, 8], strides = [1, 1]} : vector<8x64xf32> to vector<8x8xf32>
      %180 = arith.truncf %179 : vector<8x8xf32> to vector<8x8xbf16>
      %c2_109 = arith.constant 2 : index
      %c0_110 = arith.constant 0 : index
      %c0_111 = arith.constant 0 : index
      %181 = vector.load %arg19[%c2_109, %c0_110, %c0_111] : memref<4x8x8xbf16, #tpu.memory_space<vmem>>, vector<1x8x8xbf16>
      %182 = vector.shape_cast %181 : vector<1x8x8xbf16> to vector<8x8xbf16>
      %183 = vector.shape_cast %180 : vector<8x8xbf16> to vector<1x8x8xbf16>
      tpu.vector_store %arg19[%c2_109, %c0_110, %c0_111], %183 {strides = array<i32>} : memref<4x8x8xbf16, #tpu.memory_space<vmem>>, vector<1x8x8xbf16>,
      %184 = vector.extract_strided_slice %153 {offsets = [0, 24], sizes = [8, 8], strides = [1, 1]} : vector<8x64xf32> to vector<8x8xf32>
      %185 = arith.truncf %184 : vector<8x8xf32> to vector<8x8xbf16>
      %c3_112 = arith.constant 3 : index
      %c0_113 = arith.constant 0 : index
      %c0_114 = arith.constant 0 : index
      %186 = vector.load %arg18[%c3_112, %c0_113, %c0_114] : memref<4x8x8xbf16, #tpu.memory_space<vmem>>, vector<1x8x8xbf16>
      %187 = vector.shape_cast %186 : vector<1x8x8xbf16> to vector<8x8xbf16>
      %188 = vector.shape_cast %185 : vector<8x8xbf16> to vector<1x8x8xbf16>
      tpu.vector_store %arg18[%c3_112, %c0_113, %c0_114], %188 {strides = array<i32>} : memref<4x8x8xbf16, #tpu.memory_space<vmem>>, vector<1x8x8xbf16>,
      %189 = vector.extract_strided_slice %153 {offsets = [0, 56], sizes = [8, 8], strides = [1, 1]} : vector<8x64xf32> to vector<8x8xf32>
      %190 = arith.truncf %189 : vector<8x8xf32> to vector<8x8xbf16>
      %c3_115 = arith.constant 3 : index
      %c0_116 = arith.constant 0 : index
      %c0_117 = arith.constant 0 : index
      %191 = vector.load %arg19[%c3_115, %c0_116, %c0_117] : memref<4x8x8xbf16, #tpu.memory_space<vmem>>, vector<1x8x8xbf16>
      %192 = vector.shape_cast %191 : vector<1x8x8xbf16> to vector<8x8xbf16>
      %193 = vector.shape_cast %190 : vector<8x8xbf16> to vector<1x8x8xbf16>
      tpu.vector_store %arg19[%c3_115, %c0_116, %c0_117], %193 {strides = array<i32>} : memref<4x8x8xbf16, #tpu.memory_space<vmem>>, vector<1x8x8xbf16>,
    } else {
    }
    %c0 = arith.constant 0 : index
    %c0_1 = arith.constant 0 : index
    %c0_2 = arith.constant 0 : index
    %3 = vector.load %arg2[%c0, %c0_1, %c0_2] : memref<1x8x32xf32, #tpu.memory_space<vmem>>, vector<1x8x32xf32>
    %4 = vector.shape_cast %3 : vector<1x8x32xf32> to vector<8x32xf32>
    %5 = arith.truncf %4 : vector<8x32xf32> to vector<8x32xbf16>
    %c0_3 = arith.constant 0 : index
    %c0_4 = arith.constant 0 : index
    %6 = vector.load %arg3[%c0_3, %c0_4] : memref<32x96xbf16, #tpu.memory_space<vmem>>, vector<32x32xbf16>
    %cst = arith.constant dense<0.000000e+00> : vector<8x32xf32>
    %7 = tpu.matmul %5, %6, %cst {dimension_numbers = #tpu.dot_dimension_numbers<[1], [0], [0], [1], [0, 0, 1, 1], [], []>} : vector<8x32xbf16>, vector<32x32xbf16>, vector<8x32xf32> -> vector<8x32xf32>
    %c0_5 = arith.constant 0 : index
    %c0_6 = arith.constant 0 : index
    %8 = vector.load %arg4[%c0_5, %c0_6] : memref<1x96xf32, #tpu.memory_space<vmem>>, vector<1x32xf32>
    %9 = vector.broadcast %8 : vector<1x32xf32> to vector<8x32xf32>
    %10 = arith.addf %7, %9 : vector<8x32xf32>
    %cst_7 = arith.constant 0.353553385 : f32
    %11 = vector.broadcast %cst_7 : f32 to vector<8x32xf32>
    %12 = arith.mulf %10, %11 : vector<8x32xf32>
    %13 = vector.extract_strided_slice %12 {offsets = [0, 0], sizes = [8, 8], strides = [1, 1]} : vector<8x32xf32> to vector<8x8xf32>
    %14 = arith.truncf %13 : vector<8x8xf32> to vector<8x8xbf16>
    %c0_8 = arith.constant 0 : index
    %c0_9 = arith.constant 0 : index
    %c0_10 = arith.constant 0 : index
    %15 = vector.load %arg17[%c0_8, %c0_9, %c0_10] : memref<4x8x8xbf16, #tpu.memory_space<vmem>>, vector<1x8x8xbf16>
    %16 = vector.shape_cast %15 : vector<1x8x8xbf16> to vector<8x8xbf16>
    %17 = vector.shape_cast %14 : vector<8x8xbf16> to vector<1x8x8xbf16>
    tpu.vector_store %arg17[%c0_8, %c0_9, %c0_10], %17 {strides = array<i32>} : memref<4x8x8xbf16, #tpu.memory_space<vmem>>, vector<1x8x8xbf16>,
    %18 = vector.extract_strided_slice %12 {offsets = [0, 8], sizes = [8, 8], strides = [1, 1]} : vector<8x32xf32> to vector<8x8xf32>
    %19 = arith.truncf %18 : vector<8x8xf32> to vector<8x8xbf16>
    %c1 = arith.constant 1 : index
    %c0_11 = arith.constant 0 : index
    %c0_12 = arith.constant 0 : index
    %20 = vector.load %arg17[%c1, %c0_11, %c0_12] : memref<4x8x8xbf16, #tpu.memory_space<vmem>>, vector<1x8x8xbf16>
    %21 = vector.shape_cast %20 : vector<1x8x8xbf16> to vector<8x8xbf16>
    %22 = vector.shape_cast %19 : vector<8x8xbf16> to vector<1x8x8xbf16>
    tpu.vector_store %arg17[%c1, %c0_11, %c0_12], %22 {strides = array<i32>} : memref<4x8x8xbf16, #tpu.memory_space<vmem>>, vector<1x8x8xbf16>,
    %23 = vector.extract_strided_slice %12 {offsets = [0, 16], sizes = [8, 8], strides = [1, 1]} : vector<8x32xf32> to vector<8x8xf32>
    %24 = arith.truncf %23 : vector<8x8xf32> to vector<8x8xbf16>
    %c2 = arith.constant 2 : index
    %c0_13 = arith.constant 0 : index
    %c0_14 = arith.constant 0 : index
    %25 = vector.load %arg17[%c2, %c0_13, %c0_14] : memref<4x8x8xbf16, #tpu.memory_space<vmem>>, vector<1x8x8xbf16>
    %26 = vector.shape_cast %25 : vector<1x8x8xbf16> to vector<8x8xbf16>
    %27 = vector.shape_cast %24 : vector<8x8xbf16> to vector<1x8x8xbf16>
    tpu.vector_store %arg17[%c2, %c0_13, %c0_14], %27 {strides = array<i32>} : memref<4x8x8xbf16, #tpu.memory_space<vmem>>, vector<1x8x8xbf16>,
    %28 = vector.extract_strided_slice %12 {offsets = [0, 24], sizes = [8, 8], strides = [1, 1]} : vector<8x32xf32> to vector<8x8xf32>
    %29 = arith.truncf %28 : vector<8x8xf32> to vector<8x8xbf16>
    %c3 = arith.constant 3 : index
    %c0_15 = arith.constant 0 : index
    %c0_16 = arith.constant 0 : index
    %30 = vector.load %arg17[%c3, %c0_15, %c0_16] : memref<4x8x8xbf16, #tpu.memory_space<vmem>>, vector<1x8x8xbf16>
    %31 = vector.shape_cast %30 : vector<1x8x8xbf16> to vector<8x8xbf16>
    %32 = vector.shape_cast %29 : vector<8x8xbf16> to vector<1x8x8xbf16>
    tpu.vector_store %arg17[%c3, %c0_15, %c0_16], %32 {strides = array<i32>} : memref<4x8x8xbf16, #tpu.memory_space<vmem>>, vector<1x8x8xbf16>,
    %c0_17 = arith.constant 0 : index
    %c0_18 = arith.constant 0 : index
    %c0_19 = arith.constant 0 : index
    %33 = vector.load %arg17[%c0_17, %c0_18, %c0_19] : memref<4x8x8xbf16, #tpu.memory_space<vmem>>, vector<4x8x8xbf16>
    %c0_20 = arith.constant 0 : index
    %c0_21 = arith.constant 0 : index
    %c0_22 = arith.constant 0 : index
    %34 = vector.load %arg18[%c0_20, %c0_21, %c0_22] : memref<4x8x8xbf16, #tpu.memory_space<vmem>>, vector<4x8x8xbf16>
    "tpu.trace_start"() <{level = 10 : i32, message = "hqd,hkd->hqk"}> : () -> ()
    %cst_23 = arith.constant dense<0.000000e+00> : vector<4x8x8xf32>
    %35 = tpu.matmul %33, %34, %cst_23 {dimension_numbers = #tpu.dot_dimension_numbers<[2], [2], [1], [1], [0, 0, 0, 1, 1, 1], [0], [0]>} : vector<4x8x8xbf16>, vector<4x8x8xbf16>, vector<4x8x8xf32> -> vector<4x8x8xf32>
    "tpu.trace_stop"() : () -> ()
    %cst_24 = arith.constant dense<0xFF800000> : vector<4x8xf32>
    %36 = vector.multi_reduction <maximumf>, %35, %cst_24 [2] : vector<4x8x8xf32> to vector<4x8xf32>
    %37 = vector.shape_cast %36 : vector<4x8xf32> to vector<4x8x1xf32>
    %38 = vector.broadcast %37 : vector<4x8x1xf32> to vector<4x8x8xf32>
    %39 = arith.subf %35, %38 : vector<4x8x8xf32>
    %40 = math.exp %39 : vector<4x8x8xf32>
    %cst_25 = arith.constant dense<0.000000e+00> : vector<4x8xf32>
    %41 = vector.multi_reduction <add>, %40, %cst_25 [2] : vector<4x8x8xf32> to vector<4x8xf32>
    %42 = vector.shape_cast %41 : vector<4x8xf32> to vector<4x8x1xf32>
    %43 = vector.broadcast %42 : vector<4x8x1xf32> to vector<4x8x8xf32>
    %44 = arith.divf %40, %43 : vector<4x8x8xf32>
    %c0_26 = arith.constant 0 : index
    %c0_27 = arith.constant 0 : index
    %c0_28 = arith.constant 0 : index
    %c0_29 = arith.constant 0 : index
    %45 = vector.load %arg16[%c0_26, %c0_27, %c0_28, %c0_29] : memref<1x4x8x8xf32, #tpu.memory_space<vmem>>, vector<1x4x8x8xf32>
    %46 = vector.shape_cast %45 : vector<1x4x8x8xf32> to vector<4x8x8xf32>
    %47 = vector.shape_cast %44 : vector<4x8x8xf32> to vector<1x4x8x8xf32>
    tpu.vector_store %arg16[%c0_26, %c0_27, %c0_28, %c0_29], %47 {strides = array<i32>} : memref<1x4x8x8xf32, #tpu.memory_space<vmem>>, vector<1x4x8x8xf32>,
    %48 = arith.truncf %44 : vector<4x8x8xf32> to vector<4x8x8xbf16>
    %c0_30 = arith.constant 0 : index
    %c0_31 = arith.constant 0 : index
    %c0_32 = arith.constant 0 : index
    %49 = vector.load %arg19[%c0_30, %c0_31, %c0_32] : memref<4x8x8xbf16, #tpu.memory_space<vmem>>, vector<4x8x8xbf16>
    "tpu.trace_start"() <{level = 10 : i32, message = "hqk,hkd->hqd"}> : () -> ()
    %cst_33 = arith.constant dense<0.000000e+00> : vector<4x8x8xf32>
    %50 = tpu.matmul %48, %49, %cst_33 {dimension_numbers = #tpu.dot_dimension_numbers<[2], [1], [1], [2], [0, 0, 0, 1, 1, 2], [0], [0]>} : vector<4x8x8xbf16>, vector<4x8x8xbf16>, vector<4x8x8xf32> -> vector<4x8x8xf32>
    "tpu.trace_stop"() : () -> ()
    %51 = vector.extract_strided_slice %50 {offsets = [0, 0, 0], sizes = [1, 8, 8], strides = [1, 1, 1]} : vector<4x8x8xf32> to vector<1x8x8xf32>
    %52 = vector.shape_cast %51 : vector<1x8x8xf32> to vector<8x8xf32>
    %53 = arith.truncf %52 : vector<8x8xf32> to vector<8x8xbf16>
    %c0_34 = arith.constant 0 : index
    %c0_35 = arith.constant 0 : index
    %54 = vector.load %arg20[%c0_34, %c0_35] : memref<8x32xbf16, #tpu.memory_space<vmem>>, vector<8x8xbf16>
    tpu.vector_store %arg20[%c0_34, %c0_35], %53 {strides = array<i32>} : memref<8x32xbf16, #tpu.memory_space<vmem>>, vector<8x8xbf16>,
    %55 = vector.extract_strided_slice %50 {offsets = [1, 0, 0], sizes = [1, 8, 8], strides = [1, 1, 1]} : vector<4x8x8xf32> to vector<1x8x8xf32>
    %56 = vector.shape_cast %55 : vector<1x8x8xf32> to vector<8x8xf32>
    %57 = arith.truncf %56 : vector<8x8xf32> to vector<8x8xbf16>
    %c0_36 = arith.constant 0 : index
    %c8 = arith.constant 8 : index
    %58 = vector.load %arg20[%c0_36, %c8] : memref<8x32xbf16, #tpu.memory_space<vmem>>, vector<8x8xbf16>
    tpu.vector_store %arg20[%c0_36, %c8], %57 {strides = array<i32>} : memref<8x32xbf16, #tpu.memory_space<vmem>>, vector<8x8xbf16>,
    %59 = vector.extract_strided_slice %50 {offsets = [2, 0, 0], sizes = [1, 8, 8], strides = [1, 1, 1]} : vector<4x8x8xf32> to vector<1x8x8xf32>
    %60 = vector.shape_cast %59 : vector<1x8x8xf32> to vector<8x8xf32>
    %61 = arith.truncf %60 : vector<8x8xf32> to vector<8x8xbf16>
    %c0_37 = arith.constant 0 : index
    %c16 = arith.constant 16 : index
    %62 = vector.load %arg20[%c0_37, %c16] : memref<8x32xbf16, #tpu.memory_space<vmem>>, vector<8x8xbf16>
    tpu.vector_store %arg20[%c0_37, %c16], %61 {strides = array<i32>} : memref<8x32xbf16, #tpu.memory_space<vmem>>, vector<8x8xbf16>,
    %63 = vector.extract_strided_slice %50 {offsets = [3, 0, 0], sizes = [1, 8, 8], strides = [1, 1, 1]} : vector<4x8x8xf32> to vector<1x8x8xf32>
    %64 = vector.shape_cast %63 : vector<1x8x8xf32> to vector<8x8xf32>
    %65 = arith.truncf %64 : vector<8x8xf32> to vector<8x8xbf16>
    %c0_38 = arith.constant 0 : index
    %c24 = arith.constant 24 : index
    %66 = vector.load %arg20[%c0_38, %c24] : memref<8x32xbf16, #tpu.memory_space<vmem>>, vector<8x8xbf16>
    tpu.vector_store %arg20[%c0_38, %c24], %65 {strides = array<i32>} : memref<8x32xbf16, #tpu.memory_space<vmem>>, vector<8x8xbf16>,
    %c0_39 = arith.constant 0 : index
    %c0_40 = arith.constant 0 : index
    %67 = vector.load %arg20[%c0_39, %c0_40] : memref<8x32xbf16, #tpu.memory_space<vmem>>, vector<8x32xbf16>
    %c0_41 = arith.constant 0 : index
    %c0_42 = arith.constant 0 : index
    %68 = vector.load %arg5[%c0_41, %c0_42] : memref<32x32xbf16, #tpu.memory_space<vmem>>, vector<32x32xbf16>
    %cst_43 = arith.constant dense<0.000000e+00> : vector<8x32xf32>
    %69 = tpu.matmul %67, %68, %cst_43 {dimension_numbers = #tpu.dot_dimension_numbers<[1], [0], [0], [1], [0, 0, 1, 1], [], []>} : vector<8x32xbf16>, vector<32x32xbf16>, vector<8x32xf32> -> vector<8x32xf32>
    %c0_44 = arith.constant 0 : index
    %c0_45 = arith.constant 0 : index
    %70 = vector.load %arg6[%c0_44, %c0_45] : memref<1x32xf32, #tpu.memory_space<vmem>>, vector<1x32xf32>
    %71 = vector.broadcast %70 : vector<1x32xf32> to vector<8x32xf32>
    %72 = arith.addf %69, %71 : vector<8x32xf32>
    %73 = arith.addf %72, %4 : vector<8x32xf32>
    %c0_46 = arith.constant 0 : index
    %c0_47 = arith.constant 0 : index
    %74 = vector.load %arg7[%c0_46, %c0_47] : memref<1x32xf32, #tpu.memory_space<vmem>>, vector<1x32xf32>
    %c0_48 = arith.constant 0 : index
    %c0_49 = arith.constant 0 : index
    %75 = vector.load %arg8[%c0_48, %c0_49] : memref<1x32xf32, #tpu.memory_space<vmem>>, vector<1x32xf32>
    %cst_50 = arith.constant dense<0.000000e+00> : vector<8xf32>
    %76 = vector.multi_reduction <add>, %73, %cst_50 [1] : vector<8x32xf32> to vector<8xf32>
    %77 = vector.shape_cast %76 : vector<8xf32> to vector<8x1xf32>
    %cst_51 = arith.constant 3.200000e+01 : f32
    %78 = vector.broadcast %cst_51 : f32 to vector<8x1xf32>
    %79 = arith.divf %77, %78 : vector<8x1xf32>
    %80 = vector.broadcast %79 : vector<8x1xf32> to vector<8x32xf32>
    %81 = arith.subf %73, %80 : vector<8x32xf32>
    %82 = arith.mulf %81, %81 : vector<8x32xf32>
    %cst_52 = arith.constant dense<0.000000e+00> : vector<8xf32>
    %83 = vector.multi_reduction <add>, %82, %cst_52 [1] : vector<8x32xf32> to vector<8xf32>
    %84 = vector.shape_cast %83 : vector<8xf32> to vector<8x1xf32>
    %cst_53 = arith.constant 3.200000e+01 : f32
    %85 = vector.broadcast %cst_53 : f32 to vector<8x1xf32>
    %86 = arith.divf %84, %85 : vector<8x1xf32>
    %87 = vector.broadcast %79 : vector<8x1xf32> to vector<8x32xf32>
    %88 = arith.subf %73, %87 : vector<8x32xf32>
    %cst_54 = arith.constant 9.99999997E-7 : f32
    %89 = vector.broadcast %cst_54 : f32 to vector<8x1xf32>
    %90 = arith.addf %86, %89 : vector<8x1xf32>
    %91 = math.rsqrt %90 : vector<8x1xf32>
    %92 = vector.broadcast %91 : vector<8x1xf32> to vector<8x32xf32>
    %93 = arith.mulf %88, %92 : vector<8x32xf32>
    %94 = vector.broadcast %74 : vector<1x32xf32> to vector<8x32xf32>
    %95 = arith.mulf %93, %94 : vector<8x32xf32>
    %96 = vector.broadcast %75 : vector<1x32xf32> to vector<8x32xf32>
    %97 = arith.addf %95, %96 : vector<8x32xf32>
    %98 = arith.truncf %97 : vector<8x32xf32> to vector<8x32xbf16>
    %cst_55 = arith.constant 0.000000e+00 : f32
    %99 = vector.broadcast %cst_55 : f32 to vector<8x32xf32>
    %c0_56 = arith.constant 0 : index
    %c0_57 = arith.constant 0 : index
    %100 = vector.load %arg21[%c0_56, %c0_57] : memref<8x32xf32, #tpu.memory_space<vmem>>, vector<8x32xf32>
    tpu.vector_store %arg21[%c0_56, %c0_57], %99 {strides = array<i32>} : memref<8x32xf32, #tpu.memory_space<vmem>>, vector<8x32xf32>,
    %c0_58 = arith.constant 0 : index
    %c0_59 = arith.constant 0 : index
    %101 = vector.load %arg9[%c0_58, %c0_59] : memref<32x128xbf16, #tpu.memory_space<vmem>>, vector<32x128xbf16>
    %cst_60 = arith.constant dense<0.000000e+00> : vector<8x128xf32>
    %102 = tpu.matmul %98, %101, %cst_60 {dimension_numbers = #tpu.dot_dimension_numbers<[1], [0], [0], [1], [0, 0, 1, 1], [], []>} : vector<8x32xbf16>, vector<32x128xbf16>, vector<8x128xf32> -> vector<8x128xf32>
    %c0_61 = arith.constant 0 : index
    %c0_62 = arith.constant 0 : index
    %103 = vector.load %arg10[%c0_61, %c0_62] : memref<1x128xf32, #tpu.memory_space<vmem>>, vector<1x128xf32>
    %104 = vector.broadcast %103 : vector<1x128xf32> to vector<8x128xf32>
    %105 = arith.addf %102, %104 : vector<8x128xf32>
    %cst_63 = arith.constant 0.000000e+00 : f32
    %106 = vector.broadcast %cst_63 : f32 to vector<8x128xf32>
    %107 = arith.maximumf %105, %106 : vector<8x128xf32>
    %c0_64 = arith.constant 0 : index
    %c0_65 = arith.constant 0 : index
    %108 = vector.load %arg21[%c0_64, %c0_65] : memref<8x32xf32, #tpu.memory_space<vmem>>, vector<8x32xf32>
    %109 = arith.truncf %107 : vector<8x128xf32> to vector<8x128xbf16>
    %c0_66 = arith.constant 0 : index
    %c0_67 = arith.constant 0 : index
    %110 = vector.load %arg11[%c0_66, %c0_67] : memref<128x32xbf16, #tpu.memory_space<vmem>>, vector<128x32xbf16>
    %cst_68 = arith.constant dense<0.000000e+00> : vector<8x32xf32>
    %111 = tpu.matmul %109, %110, %cst_68 {dimension_numbers = #tpu.dot_dimension_numbers<[1], [0], [0], [1], [0, 0, 1, 1], [], []>} : vector<8x128xbf16>, vector<128x32xbf16>, vector<8x32xf32> -> vector<8x32xf32>
    %112 = arith.addf %108, %111 : vector<8x32xf32>
    %c0_69 = arith.constant 0 : index
    %c0_70 = arith.constant 0 : index
    %113 = vector.load %arg21[%c0_69, %c0_70] : memref<8x32xf32, #tpu.memory_space<vmem>>, vector<8x32xf32>
    tpu.vector_store %arg21[%c0_69, %c0_70], %112 {strides = array<i32>} : memref<8x32xf32, #tpu.memory_space<vmem>>, vector<8x32xf32>,
    %c0_71 = arith.constant 0 : index
    %c0_72 = arith.constant 0 : index
    %114 = vector.load %arg21[%c0_71, %c0_72] : memref<8x32xf32, #tpu.memory_space<vmem>>, vector<8x32xf32>
    %c0_73 = arith.constant 0 : index
    %c0_74 = arith.constant 0 : index
    %115 = vector.load %arg12[%c0_73, %c0_74] : memref<1x32xf32, #tpu.memory_space<vmem>>, vector<1x32xf32>
    %116 = vector.broadcast %115 : vector<1x32xf32> to vector<8x32xf32>
    %117 = arith.addf %114, %116 : vector<8x32xf32>
    %118 = arith.addf %117, %97 : vector<8x32xf32>
    %c0_75 = arith.constant 0 : index
    %c0_76 = arith.constant 0 : index
    %119 = vector.load %arg13[%c0_75, %c0_76] : memref<1x32xf32, #tpu.memory_space<vmem>>, vector<1x32xf32>
    %c0_77 = arith.constant 0 : index
    %c0_78 = arith.constant 0 : index
    %120 = vector.load %arg14[%c0_77, %c0_78] : memref<1x32xf32, #tpu.memory_space<vmem>>, vector<1x32xf32>
    %cst_79 = arith.constant dense<0.000000e+00> : vector<8xf32>
    %121 = vector.multi_reduction <add>, %118, %cst_79 [1] : vector<8x32xf32> to vector<8xf32>
    %122 = vector.shape_cast %121 : vector<8xf32> to vector<8x1xf32>
    %cst_80 = arith.constant 3.200000e+01 : f32
    %123 = vector.broadcast %cst_80 : f32 to vector<8x1xf32>
    %124 = arith.divf %122, %123 : vector<8x1xf32>
    %125 = vector.broadcast %124 : vector<8x1xf32> to vector<8x32xf32>
    %126 = arith.subf %118, %125 : vector<8x32xf32>
    %127 = arith.mulf %126, %126 : vector<8x32xf32>
    %cst_81 = arith.constant dense<0.000000e+00> : vector<8xf32>
    %128 = vector.multi_reduction <add>, %127, %cst_81 [1] : vector<8x32xf32> to vector<8xf32>
    %129 = vector.shape_cast %128 : vector<8xf32> to vector<8x1xf32>
    %cst_82 = arith.constant 3.200000e+01 : f32
    %130 = vector.broadcast %cst_82 : f32 to vector<8x1xf32>
    %131 = arith.divf %129, %130 : vector<8x1xf32>
    %132 = vector.broadcast %124 : vector<8x1xf32> to vector<8x32xf32>
    %133 = arith.subf %118, %132 : vector<8x32xf32>
    %cst_83 = arith.constant 9.99999997E-7 : f32
    %134 = vector.broadcast %cst_83 : f32 to vector<8x1xf32>
    %135 = arith.addf %131, %134 : vector<8x1xf32>
    %136 = math.rsqrt %135 : vector<8x1xf32>
    %137 = vector.broadcast %136 : vector<8x1xf32> to vector<8x32xf32>
    %138 = arith.mulf %133, %137 : vector<8x32xf32>
    %139 = vector.broadcast %119 : vector<1x32xf32> to vector<8x32xf32>
    %140 = arith.mulf %138, %139 : vector<8x32xf32>
    %141 = vector.broadcast %120 : vector<1x32xf32> to vector<8x32xf32>
    %142 = arith.addf %140, %141 : vector<8x32xf32>
    %c0_84 = arith.constant 0 : index
    %c0_85 = arith.constant 0 : index
    %c0_86 = arith.constant 0 : index
    %143 = vector.load %arg15[%c0_84, %c0_85, %c0_86] : memref<1x8x32xf32, #tpu.memory_space<vmem>>, vector<1x8x32xf32>
    %144 = vector.shape_cast %143 : vector<1x8x32xf32> to vector<8x32xf32>
    %145 = vector.shape_cast %142 : vector<8x32xf32> to vector<1x8x32xf32>
    tpu.vector_store %arg15[%c0_84, %c0_85, %c0_86], %145 {strides = array<i32>} : memref<1x8x32xf32, #tpu.memory_space<vmem>>, vector<1x8x32xf32>,
    return
  }
  func.func @transform_0(%arg0: i32, %arg1: i32) -> (i32, i32, i32) {
    %c0_i32 = arith.constant 0 : i32
    %c0_i32_0 = arith.constant 0 : i32
    %c0_i32_1 = arith.constant 0 : i32
    return %arg0, %c0_i32, %c0_i32_0 : i32, i32, i32
  }
  func.func @transform_1(%arg0: i32, %arg1: i32) -> (i32, i32) {
    %c0_i32 = arith.constant 0 : i32
    %c0_i32_0 = arith.constant 0 : i32
    %c0_i32_1 = arith.constant 0 : i32
    return %c0_i32, %c0_i32_0 : i32, i32
  }
  func.func @transform_2(%arg0: i32, %arg1: i32) -> (i32, i32) {
    %c0_i32 = arith.constant 0 : i32
    %c0_i32_0 = arith.constant 0 : i32
    %c0_i32_1 = arith.constant 0 : i32
    return %c0_i32, %c0_i32_0 : i32, i32
  }
  func.func @transform_3(%arg0: i32, %arg1: i32) -> (i32, i32) {
    %c0_i32 = arith.constant 0 : i32
    %c0_i32_0 = arith.constant 0 : i32
    %c0_i32_1 = arith.constant 0 : i32
    return %c0_i32, %c0_i32_0 : i32, i32
  }
  func.func @transform_4(%arg0: i32, %arg1: i32) -> (i32, i32) {
    %c0_i32 = arith.constant 0 : i32
    %c0_i32_0 = arith.constant 0 : i32
    %c0_i32_1 = arith.constant 0 : i32
    return %c0_i32, %c0_i32_0 : i32, i32
  }
  func.func @transform_5(%arg0: i32, %arg1: i32) -> (i32, i32) {
    %c0_i32 = arith.constant 0 : i32
    %c0_i32_0 = arith.constant 0 : i32
    %c0_i32_1 = arith.constant 0 : i32
    return %c0_i32, %c0_i32_0 : i32, i32
  }
  func.func @transform_6(%arg0: i32, %arg1: i32) -> (i32, i32) {
    %c0_i32 = arith.constant 0 : i32
    %c0_i32_0 = arith.constant 0 : i32
    %c0_i32_1 = arith.constant 0 : i32
    return %c0_i32, %c0_i32_0 : i32, i32
  }
  func.func @transform_7(%arg0: i32, %arg1: i32) -> (i32, i32) {
    %c0_i32 = arith.constant 0 : i32
    %c0_i32_0 = arith.constant 0 : i32
    %c0_i32_1 = arith.constant 0 : i32
    return %c0_i32, %c0_i32_0 : i32, i32
  }
  func.func @transform_8(%arg0: i32, %arg1: i32) -> (i32, i32) {
    %c0_i32 = arith.constant 0 : i32
    %c0_i32_0 = arith.constant 0 : i32
    %c0_i32_1 = arith.constant 0 : i32
    return %c0_i32, %c0_i32_0 : i32, i32
  }
  func.func @transform_9(%arg0: i32, %arg1: i32) -> (i32, i32) {
    %c0_i32 = arith.constant 0 : i32
    %c0_i32_0 = arith.constant 0 : i32
    %c0_i32_1 = arith.constant 0 : i32
    return %c0_i32, %c0_i32_0 : i32, i32
  }
  func.func @transform_10(%arg0: i32, %arg1: i32) -> (i32, i32) {
    %c0_i32 = arith.constant 0 : i32
    %c0_i32_0 = arith.constant 0 : i32
    %c0_i32_1 = arith.constant 0 : i32
    return %c0_i32, %c0_i32_0 : i32, i32
  }
  func.func @transform_11(%arg0: i32, %arg1: i32) -> (i32, i32) {
    %c0_i32 = arith.constant 0 : i32
    %c0_i32_0 = arith.constant 0 : i32
    %c0_i32_1 = arith.constant 0 : i32
    return %c0_i32, %c0_i32_0 : i32, i32
  }
  func.func @transform_12(%arg0: i32, %arg1: i32) -> (i32, i32) {
    %c0_i32 = arith.constant 0 : i32
    %c0_i32_0 = arith.constant 0 : i32
    %c0_i32_1 = arith.constant 0 : i32
    return %c0_i32, %c0_i32_0 : i32, i32
  }
  func.func @transform_13(%arg0: i32, %arg1: i32) -> (i32, i32, i32) {
    %c0_i32 = arith.constant 0 : i32
    %c0_i32_0 = arith.constant 0 : i32
    return %arg0, %arg1, %c0_i32 : i32, i32, i32
  }
  func.func @transform_14(%arg0: i32, %arg1: i32) -> (i32, i32, i32, i32) {
    %c0_i32 = arith.constant 0 : i32
    %c0_i32_0 = arith.constant 0 : i32
    %c0_i32_1 = arith.constant 0 : i32
    return %arg0, %c0_i32, %arg1, %c0_i32_0 : i32, i32, i32, i32
  }
}

</mosaic_0001>

<bundles_post_ra>
// kernel: tpu_custom_call.1
= control target key start
LH: loop header
LB: loop body
LE: loop exit
PB: predicated region body
PF: predicated region fallthrough
CT: control target
= control target key end

     0   :  { %s3635_s0 = inlined_call_operand.hbm [shape: f32[2,8,32], index: 0, kind: input, shape index: {}]   ;;  %s3636_s1 = inlined_call_operand.hbm [shape: bf16[32,96], index: 1, kind: input, shape index: {}]   ;;  %s3637_s2 = inlined_call_operand.hbm [shape: f32[1,96], index: 2, kind: input, shape index: {}]   ;;  %s3638_s3 = inlined_call_operand.hbm [shape: bf16[32,32], index: 3, kind: input, shape index: {}]   ;;  %s3639_s4 = inlined_call_operand.hbm [shape: f32[1,32], index: 4, kind: input, shape index: {}]   ;;  %s3640_s5 = inlined_call_operand.hbm [shape: f32[1,32], index: 5, kind: input, shape index: {}]   ;;  %s3641_s6 = inlined_call_operand.hbm [shape: f32[1,32], index: 6, kind: input, shape index: {}]   ;;  %s3642_s7 = inlined_call_operand.hbm [shape: bf16[32,128], index: 7, kind: input, shape index: {}]   ;;  %s3643_s8 = inlined_call_operand.hbm [shape: f32[1,128], index: 8, kind: input, shape index: {}]   ;;  %s3644_s9 = inlined_call_operand.hbm [shape: bf16[128,32], index: 9, kind: input, shape index: {}]   ;;  %s3645_s10 = inlined_call_operand.hbm [shape: f32[1,32], index: 10, kind: input, shape index: {}]   ;;  %s3646_s11 = inlined_call_operand.hbm [shape: f32[1,32], index: 11, kind: input, shape index: {}]   ;;  %s3647_s12 = inlined_call_operand.hbm [shape: f32[1,32], index: 12, kind: input, shape index: {}]   ;;  %s3648_s13 = inlined_call_operand.hbm [shape: f32[2,8,32], index: 13, kind: output, shape index: {0}]   ;;  %s3649_s14 = inlined_call_operand.hbm [shape: f32[2,4,8,8], index: 14, kind: output, shape index: {1}]  }
   0x1   :  { %3668 = sst [smem:[#allocation45_spill]] %s3635_s0 }
   0x2   :  { %3669 = sst [smem:[#allocation46_spill]] %s3636_s1 }
   0x3   :  { %3670 = sst [smem:[#allocation47_spill]] %s3637_s2 }
   0x4   :  { %3671 = sst [smem:[#allocation48_spill]] %s3638_s3 }
   0x5   :  { %3672 = sst [smem:[#allocation49_spill]] %s3648_s13 }
   0x6   :  { %3673 = sst [smem:[#allocation50_spill]] %s3649_s14 }
   0x7   :  { %20 = vsyncpa [#allocation8], 0 }
   0x8   :  { %22 = vsyncpa [#allocation8 + $0x1], 0 }
   0x9   :  { %23 = vsyncpa [#allocation11], 0 }
   0xa   :  { %24 = vsyncpa [#allocation14], 0 }
   0xb   :  { %25 = vsyncpa [#allocation17], 0 }
   0xc   :  { %26 = vsyncpa [#allocation20], 0 }
   0xd   :  { %27 = vsyncpa [#allocation23], 0 }
   0xe   :  { %28 = vsyncpa [#allocation26], 0 }
   0xf   :  { %29 = vsyncpa [#allocation9], 0 }
  0x10   :  { %31 = vsyncpa [#allocation9 + $0x1], 0 }
  0x11   :  { %32 = vsyncpa [#allocation30], 0 }
  0x12   :  { %34 = vsyncpa [#allocation30 + $0x1], 0  ;;  %s2997_s29 = smov 0   ;;  %s2999_s30 = smov 0  }
  0x13   :  { %s3001_s15 = smov 0   ;;  %s3003_s16 = smov 0  }
  0x14   :  { %s3005_s17 = smov 0   ;;  %s3007_s18 = smov 0  }
  0x15 LB: > { %3674 = sst [smem:[#allocation40_spill]] %s2870_s29  ;;  %s3650_s19 = sadd.s32 4294967295, %s2890_s18   ;;  %s2890_s18 = sphi %s3007_s18, %s40_s18   ;;  %s2886_s17 = sphi %s3005_s17, %s3717_s17   ;;  %s2882_s16 = sphi %s3003_s16, %s3716_s16   ;;  %s2878_s15 = sphi %s3001_s15, %s3715_s15   ;;  %s2874_s30 = sphi %s2999_s30, %s3714_s30   ;;  %s2870_s29 = sphi %s2997_s29, %s3713_s29  }
  0x16   : > { %3675 = sst [smem:[#allocation41_spill]] %s2874_s30  ;;  %p1923_p0 = scmp.ge.s32.totalorder %s2890_s18, 1 }
  0x17   : > { %3676 = sst [smem:[#allocation42_spill]] %s2882_s16  ;;  %p3031_p1 = scmp.eq.s32.totalorder %s3650_s19, 0 }
  0x18   : > { %p391_p2 = scmp.lt.s32.totalorder %s2890_s18, 3  ;;  %s2892_s22 = smov [#allocation10]  }
  0x19   : > { %s3677_s20 = scalar_select %p3031_p1, 1, 0 }
  0x1a   : > { %p3036_p3 = pnand %p1923_p0, %p391_p2  ;;  %s403_s23 = sshll.u32 %s2892_s22, 4  ;;  %s3040_s23 = int_to_ptr.vmem [resolvable:$true] %s403_s23 }
  0x1b   : > { %3678 = sst [smem:[#allocation43_spill]] %s3677_s20  ;;  %s2893_s25 = smov [#allocation13]  }
  0x1c   : > { %s3679_s21 = scalar_select %p3036_p3, 1, 0 }
  0x1d   : > { %p2201_p4 = pneg %p3036_p3  ;;  %s427_s26 = sshll.u32 %s2893_s25, 4  ;;  %s3051_s26 = int_to_ptr.vmem [resolvable:$true] %s427_s26 }
  0x1e   : > { %3680 = sst [smem:[#allocation44_spill]] %s3679_s21  ;;  %s2894_s27 = smov [#allocation16]  }
  0x1f   : > { %p3047_p6 = pnand %p2201_p4, %p3031_p1  ;;  %s3053_s28 = sshll.u32 %s2894_s27, 4  ;;  %s453_s28 = int_to_ptr.vmem [resolvable:$true] %s3053_s28 }
  0x20   : > { %s3682_s1 = sld [smem:[#allocation46_spill]] }
  0x21   : > { %p3063_p8 = pneg %p3047_p6 }
  0x26   : > { %s2386_s13 = scalar_lea.hbm %s3682_s1, 256 }
  0x27   : > { %p2387_p7 = scmp.ne.s32.totalorder %s3682_s1, %s2386_s13  ;;  %p2393_p11 = scmp.lt.u32.totalorder %s2386_s13, %s3682_s1 }
  0x29   : > { %p2389_p9 = pnand %p3063_p8, %p2387_p7 }
  0x2b   : > { %p2390_p10 = pneg %p2389_p9 }
  0x2d   : > { %p2395_p12 = pnand %p2393_p11, %p2390_p10 }
  0x2f   : > { %2398 = shalt.err (!%p2395_p12)
}
  0x30   : > { %s2399_s14 = scalar_lea.vmem %s3040_s23, 256  ;;  %p2407_p4 = scmp.lt.s32.totalorder %s3040_s23, %s3040_s23 }
  0x31   : > { %p2400_p13 = scmp.ne.s32.totalorder %s3040_s23, %s2399_s14  ;;  %p2408_p5 = scmp.lt.s32.totalorder %s2399_s14, %s2399_s14 }
  0x33   : > { %p2402_p0 = pnand %p2400_p13, %p3063_p8  ;;  %p2409_p7 = por %p2408_p5, %p2407_p4 }
  0x35   : > { %p2403_p2 = pneg %p2402_p0 }
  0x37   : > { %p2410_p9 = pnand %p2409_p7, %p2403_p2 }
  0x39   : > { %2413 = shalt.err (!%p2410_p9)
}
  0x3a   : > { %s3662_s16 = smov 64   ;;  %s2896_s13 = smov 4  }
  0x3b   : > { %2204 = dma.hbm_to_vmem [thread:$0]  (!%p3047_p6), %s3682_s1, 256, %s3040_s23, [#allocation11], %s3662_s16, %s3662_s16, %s2896_s13  }
  0x3c   : > { %s3684_s3 = sld [smem:[#allocation48_spill]] }
  0x42   : > { %s2414_s14 = scalar_lea.hbm %s3684_s3, 256 }
  0x43   : > { %p2415_p5 = scmp.ne.s32.totalorder %s3684_s3, %s2414_s14  ;;  %p2421_p12 = scmp.lt.u32.totalorder %s2414_s14, %s3684_s3 }
  0x45   : > { %p2417_p10 = pnand %p2415_p5, %p3063_p8 }
  0x47   : > { %p2418_p11 = pneg %p2417_p10 }
  0x49   : > { %p2423_p13 = pnand %p2421_p12, %p2418_p11 }
  0x4b   : > { %2426 = shalt.err (!%p2423_p13)
}
  0x4c   : > { %s2427_s23 = scalar_lea.vmem %s3051_s26, 256  ;;  %p2435_p7 = scmp.lt.s32.totalorder %s3051_s26, %s3051_s26 }
  0x4d   : > { %p2428_p0 = scmp.ne.s32.totalorder %s3051_s26, %s2427_s23  ;;  %p2436_p9 = scmp.lt.s32.totalorder %s2427_s23, %s2427_s23 }
  0x4f   : > { %p2430_p2 = pnand %p2428_p0, %p3063_p8  ;;  %p2437_p5 = por %p2436_p9, %p2435_p7 }
  0x51   : > { %p2431_p4 = pneg %p2430_p2 }
  0x53   : > { %p2438_p10 = pnand %p2437_p5, %p2431_p4 }
  0x55   : > { %2441 = shalt.err (!%p2438_p10)
}
  0x56   : > { %2210 = dma.hbm_to_vmem [thread:$0]  (!%p3047_p6), %s3684_s3, 256, %s3051_s26, [#allocation14], %s3662_s16, %s3662_s16, %s2896_s13  }
  0x57   : > { %s2442_s19 = scalar_lea.hbm %s3640_s5, 16 }
  0x58   : > { %p2443_p11 = scmp.ne.s32.totalorder %s3640_s5, %s2442_s19  ;;  %p2449_p0 = scmp.lt.u32.totalorder %s2442_s19, %s3640_s5 }
  0x5a   : > { %p2445_p12 = pnand %p2443_p11, %p3063_p8 }
  0x5c   : > { %p2446_p13 = pneg %p2445_p12 }
  0x5e   : > { %p2451_p2 = pnand %p2449_p0, %p2446_p13 }
  0x60   : > { %2454 = shalt.err (!%p2451_p2)
}
  0x61   : > { %s2455_s23 = scalar_lea.vmem %s453_s28, 16  ;;  %s2462_s26 = scalar_lea.vmem %s453_s28, 32 }
  0x62   : > { %p2456_p4 = scmp.ne.s32.totalorder %s453_s28, %s2455_s23  ;;  %p2463_p5 = scmp.lt.s32.totalorder %s453_s28, %s453_s28 }
  0x63   : > { %p2464_p10 = scmp.lt.s32.totalorder %s2462_s26, %s2455_s23 }
  0x64   : > { %p2458_p7 = pnand %p2456_p4, %p3063_p8 }
  0x65   : > { %p2465_p3 = por %p2464_p10, %p2463_p5 }
  0x66   : > { %p2459_p9 = pneg %p2458_p7 }
  0x68   : > { %p2466_p1 = pnand %p2465_p3, %p2459_p9 }
  0x6a   : > { %2469 = shalt.err (!%p2466_p1)
}
  0x6b   : > { %2216 = dma.hbm_to_vmem [thread:$0]  (!%p3047_p6), %s3640_s5, 16, %s453_s28, [#allocation17]  }
  0x6c   : > { %s2897_s30 = smov [#allocation19]   ;;  %s2898_s19 = smov [#allocation22]  }
  0x6d   : > { %s473_s20 = sshll.u32 %s2897_s30, 4  ;;  %s497_s22 = sshll.u32 %s2898_s19, 4  ;;  %s474_s20 = int_to_ptr.vmem [resolvable:$true] %s473_s20  ;;  %s498_s22 = int_to_ptr.vmem [resolvable:$true] %s497_s22 }
  0x6e   : > { %s2470_s14 = scalar_lea.hbm %s3642_s7, 256 }
  0x6f   : > { %p2471_p1 = scmp.ne.s32.totalorder %s3642_s7, %s2470_s14  ;;  %p2477_p12 = scmp.lt.u32.totalorder %s2470_s14, %s3642_s7 }
  0x71   : > { %p2473_p3 = pnand %p2471_p1, %p3063_p8 }
  0x73   : > { %p2474_p11 = pneg %p2473_p3 }
  0x75   : > { %p2479_p13 = pnand %p2477_p12, %p2474_p11 }
  0x77   : > { %2482 = shalt.err (!%p2479_p13)
}
  0x78   : > { %s2483_s28 = scalar_lea.vmem %s474_s20, 256  ;;  %p2491_p7 = scmp.lt.s32.totalorder %s474_s20, %s474_s20 }
  0x79   : > { %p2484_p0 = scmp.ne.s32.totalorder %s474_s20, %s2483_s28  ;;  %p2492_p9 = scmp.lt.s32.totalorder %s2483_s28, %s2483_s28 }
  0x7b   : > { %p2486_p2 = pnand %p2484_p0, %p3063_p8  ;;  %p2493_p5 = por %p2492_p9, %p2491_p7 }
  0x7d   : > { %p2487_p4 = pneg %p2486_p2 }
  0x7f   : > { %p2494_p10 = pnand %p2493_p5, %p2487_p4 }
  0x81   : > { %2497 = shalt.err (!%p2494_p10)
}
  0x82   : > { %s3685_s29 = smov 64   ;;  %s2498_s27 = scalar_lea.hbm %s3644_s9, 1024 }
  0x83   : > { %2222 = dma.hbm_to_vmem [thread:$0]  (!%p3047_p6), %s3642_s7, 256, %s474_s20, [#allocation20], %s3685_s29, %s3685_s29, %s2896_s13  }
  0x84   : > { %p2499_p1 = scmp.ne.s32.totalorder %s3644_s9, %s2498_s27  ;;  %p2505_p12 = scmp.lt.u32.totalorder %s2498_s27, %s3644_s9 }
  0x86   : > { %p2501_p3 = pnand %p2499_p1, %p3063_p8 }
  0x88   : > { %p2502_p11 = pneg %p2501_p3 }
  0x8a   : > { %p2507_p13 = pnand %p2505_p12, %p2502_p11 }
  0x8c   : > { %2510 = shalt.err (!%p2507_p13)
}
  0x8d   : > { %s2511_s28 = scalar_lea.vmem %s498_s22, 1024  ;;  %p2519_p7 = scmp.lt.s32.totalorder %s498_s22, %s498_s22 }
  0x8e   : > { %p2512_p0 = scmp.ne.s32.totalorder %s498_s22, %s2511_s28  ;;  %p2520_p9 = scmp.lt.s32.totalorder %s2511_s28, %s2511_s28 }
  0x90   : > { %p2514_p2 = pnand %p2512_p0, %p3063_p8  ;;  %p2521_p5 = por %p2520_p9, %p2519_p7 }
  0x92   : > { %p2515_p4 = pneg %p2514_p2 }
  0x94   : > { %p2522_p10 = pnand %p2521_p5, %p2515_p4 }
  0x96   : > { %2525 = shalt.err (!%p2522_p10)
}
  0x97   : > { %2228 = dma.hbm_to_vmem [thread:$0]  (!%p3047_p6), %s3644_s9, 1024, %s498_s22, [#allocation23], %s3685_s29, %s3685_s29, %s2896_s13  }
  0x98   : > { %s2899_s30 = smov [#allocation25]   ;;  %s2900_s25 = smov [#allocation12]  }
  0x99   : > { %s522_s19 = sshll.u32 %s2899_s30, 4  ;;  %s417_s27 = sshll.u32 %s2900_s25, 4  ;;  %s523_s19 = int_to_ptr.vmem [resolvable:$true] %s522_s19  ;;  %s418_s27 = int_to_ptr.vmem [resolvable:$true] %s417_s27 }
  0x9a   : > { %s2526_s26 = scalar_lea.hbm %s3646_s11, 16 }
  0x9b   : > { %p2527_p1 = scmp.ne.s32.totalorder %s3646_s11, %s2526_s26  ;;  %p2533_p12 = scmp.lt.u32.totalorder %s2526_s26, %s3646_s11 }
  0x9d   : > { %p2529_p3 = pnand %p2527_p1, %p3063_p8 }
  0x9f   : > { %p2530_p11 = pneg %p2529_p3 }
  0xa1   : > { %p2535_p13 = pnand %p2533_p12, %p2530_p11 }
  0xa3   : > { %2538 = shalt.err (!%p2535_p13)
}
  0xa4   : > { %s2539_s13 = scalar_lea.vmem %s523_s19, 16  ;;  %s2546_s22 = scalar_lea.vmem %s523_s19, 32 }
  0xa5   : > { %p2540_p0 = scmp.ne.s32.totalorder %s523_s19, %s2539_s13  ;;  %p2547_p7 = scmp.lt.s32.totalorder %s523_s19, %s523_s19 }
  0xa6   : > { %p2548_p9 = scmp.lt.s32.totalorder %s2546_s22, %s2539_s13 }
  0xa7   : > { %p2542_p2 = pnand %p2540_p0, %p3063_p8 }
  0xa8   : > { %p2549_p5 = por %p2548_p9, %p2547_p7 }
  0xa9   : > { %p2543_p4 = pneg %p2542_p2 }
  0xab   : > { %p2550_p10 = pnand %p2549_p5, %p2543_p4 }
  0xad   : > { %2553 = shalt.err (!%p2550_p10)
}
  0xae   : > { %2234 = dma.hbm_to_vmem [thread:$0]  (!%p3047_p6), %s3646_s11, 16, %s523_s19, [#allocation26]  }
  0xaf   : > { %s3686_s2 = sld [smem:[#allocation47_spill]] }
  0xb5   : > { %s2554_s25 = scalar_lea.hbm %s3686_s2, 16 }
  0xb6   : > { %p2555_p1 = scmp.ne.s32.totalorder %s3686_s2, %s2554_s25  ;;  %p2561_p12 = scmp.lt.u32.totalorder %s2554_s25, %s3686_s2 }
  0xb8   : > { %p2557_p3 = pnand %p2555_p1, %p3063_p8 }
  0xba   : > { %p2558_p11 = pneg %p2557_p3 }
  0xbc   : > { %p2563_p13 = pnand %p2561_p12, %p2558_p11 }
  0xbe   : > { %2566 = shalt.err (!%p2563_p13)
}
  0xbf   : > { %s2567_s28 = scalar_lea.vmem %s418_s27, 16  ;;  %s2574_s19 = scalar_lea.vmem %s418_s27, 32 }
  0xc0   : > { %p2568_p0 = scmp.ne.s32.totalorder %s418_s27, %s2567_s28  ;;  %p2575_p7 = scmp.lt.s32.totalorder %s418_s27, %s418_s27 }
  0xc1   : > { %p2576_p9 = scmp.lt.s32.totalorder %s2574_s19, %s2567_s28 }
  0xc2   : > { %p2570_p2 = pnand %p2568_p0, %p3063_p8 }
  0xc3   : > { %p2577_p5 = por %p2576_p9, %p2575_p7 }
  0xc4   : > { %p2571_p4 = pneg %p2570_p2 }
  0xc6   : > { %p2578_p10 = pnand %p2577_p5, %p2571_p4 }
  0xc8   : > { %2581 = shalt.err (!%p2578_p10)
}
  0xc9   : > { %2207 = dma.hbm_to_vmem [thread:$0]  (!%p3047_p6), %s3686_s2, 16, %s418_s27, [#allocation11]  }
  0xca   : > { %s2901_s22 = smov [#allocation15]   ;;  %s2902_s16 = smov [#allocation18]  }
  0xcb   : > { %s441_s29 = sshll.u32 %s2901_s22, 4  ;;  %s463_s1 = sshll.u32 %s2902_s16, 4  ;;  %s442_s29 = int_to_ptr.vmem [resolvable:$true] %s441_s29  ;;  %s464_s1 = int_to_ptr.vmem [resolvable:$true] %s463_s1 }
  0xcc   : > { %s2582_s14 = scalar_lea.hbm %s3639_s4, 16 }
  0xcd   : > { %p2583_p1 = scmp.ne.s32.totalorder %s3639_s4, %s2582_s14  ;;  %p2589_p12 = scmp.lt.u32.totalorder %s2582_s14, %s3639_s4 }
  0xcf   : > { %p2585_p3 = pnand %p2583_p1, %p3063_p8 }
  0xd1   : > { %p2586_p11 = pneg %p2585_p3 }
  0xd3   : > { %p2591_p13 = pnand %p2589_p12, %p2586_p11 }
  0xd5   : > { %2594 = shalt.err (!%p2591_p13)
}
  0xd6   : > { %s2595_s27 = scalar_lea.vmem %s442_s29, 16  ;;  %s2602_s19 = scalar_lea.vmem %s442_s29, 32 }
  0xd7   : > { %p2596_p0 = scmp.ne.s32.totalorder %s442_s29, %s2595_s27  ;;  %p2603_p7 = scmp.lt.s32.totalorder %s442_s29, %s442_s29 }
  0xd8   : > { %p2604_p9 = scmp.lt.s32.totalorder %s2602_s19, %s2595_s27 }
  0xd9   : > { %p2598_p2 = pnand %p2596_p0, %p3063_p8 }
  0xda   : > { %p2605_p5 = por %p2604_p9, %p2603_p7 }
  0xdb   : > { %p2599_p4 = pneg %p2598_p2 }
  0xdd   : > { %p2606_p10 = pnand %p2605_p5, %p2599_p4 }
  0xdf   : > { %2609 = shalt.err (!%p2606_p10)
}
  0xe0   : > { %2213 = dma.hbm_to_vmem [thread:$0]  (!%p3047_p6), %s3639_s4, 16, %s442_s29, [#allocation14]  }
  0xe1   : > { %s2610_s30 = scalar_lea.hbm %s3641_s6, 16 }
  0xe2   : > { %p2611_p1 = scmp.ne.s32.totalorder %s3641_s6, %s2610_s30  ;;  %p2617_p12 = scmp.lt.u32.totalorder %s2610_s30, %s3641_s6 }
  0xe4   : > { %p2613_p3 = pnand %p2611_p1, %p3063_p8 }
  0xe6   : > { %p2614_p11 = pneg %p2613_p3 }
  0xe8   : > { %p2619_p13 = pnand %p2617_p12, %p2614_p11 }
  0xea   : > { %2622 = shalt.err (!%p2619_p13)
}
  0xeb   : > { %s2623_s0 = scalar_lea.vmem %s464_s1, 16  ;;  %s2630_s29 = scalar_lea.vmem %s464_s1, 32 }
  0xec   : > { %p2624_p0 = scmp.ne.s32.totalorder %s464_s1, %s2623_s0  ;;  %p2631_p7 = scmp.lt.s32.totalorder %s464_s1, %s464_s1 }
  0xed   : > { %p2632_p9 = scmp.lt.s32.totalorder %s2630_s29, %s2623_s0 }
  0xee   : > { %p2626_p2 = pnand %p2624_p0, %p3063_p8 }
  0xef   : > { %p2633_p5 = por %p2632_p9, %p2631_p7 }
  0xf0   : > { %p2627_p4 = pneg %p2626_p2 }
  0xf2   : > { %p2634_p10 = pnand %p2633_p5, %p2627_p4 }
  0xf4   : > { %2637 = shalt.err (!%p2634_p10)
}
  0xf5   : > { %2219 = dma.hbm_to_vmem [thread:$0]  (!%p3047_p6), %s3641_s6, 16, %s464_s1, [#allocation17]  }
  0xf6   : > { %s2903_s19 = smov [#allocation21]   ;;  %s2904_s13 = smov [#allocation24]  }
  0xf7   : > { %s487_s20 = sshll.u32 %s2903_s19, 4  ;;  %s511_s22 = sshll.u32 %s2904_s13, 4  ;;  %s488_s20 = int_to_ptr.vmem [resolvable:$true] %s487_s20  ;;  %s512_s22 = int_to_ptr.vmem [resolvable:$true] %s511_s22 }
  0xf8   : > { %s2638_s25 = scalar_lea.hbm %s3643_s8, 16 }
  0xf9   : > { %p2639_p1 = scmp.ne.s32.totalorder %s3643_s8, %s2638_s25  ;;  %p2645_p12 = scmp.lt.u32.totalorder %s2638_s25, %s3643_s8 }
  0xfb   : > { %p2641_p3 = pnand %p2639_p1, %p3063_p8 }
  0xfd   : > { %p2642_p11 = pneg %p2641_p3 }
  0xff   : > { %p2647_p13 = pnand %p2645_p12, %p2642_p11 }
 0x101   : > { %2650 = shalt.err (!%p2647_p13)
}
 0x102   : > { %s2651_s1 = scalar_lea.vmem %s488_s20, 16  ;;  %s2658_s29 = scalar_lea.vmem %s488_s20, 32 }
 0x103   : > { %p2652_p0 = scmp.ne.s32.totalorder %s488_s20, %s2651_s1  ;;  %p2659_p7 = scmp.lt.s32.totalorder %s488_s20, %s488_s20 }
 0x104   : > { %p2660_p9 = scmp.lt.s32.totalorder %s2658_s29, %s2651_s1 }
 0x105   : > { %p2654_p2 = pnand %p2652_p0, %p3063_p8 }
 0x106   : > { %p2661_p5 = por %p2660_p9, %p2659_p7 }
 0x107   : > { %p2655_p4 = pneg %p2654_p2 }
 0x109   : > { %p2662_p10 = pnand %p2661_p5, %p2655_p4 }
 0x10b   : > { %2665 = shalt.err (!%p2662_p10)
}
 0x10c   : > { %2225 = dma.hbm_to_vmem [thread:$0]  (!%p3047_p6), %s3643_s8, 16, %s488_s20, [#allocation20]  }
 0x10d   : > { %s2666_s16 = scalar_lea.hbm %s3645_s10, 16 }
 0x10e   : > { %p2667_p1 = scmp.ne.s32.totalorder %s3645_s10, %s2666_s16  ;;  %p2673_p12 = scmp.lt.u32.totalorder %s2666_s16, %s3645_s10 }
 0x110   : > { %p2669_p3 = pnand %p2667_p1, %p3063_p8 }
 0x112   : > { %p2670_p11 = pneg %p2669_p3 }
 0x114   : > { %p2675_p13 = pnand %p2673_p12, %p2670_p11 }
 0x116   : > { %2678 = shalt.err (!%p2675_p13)
}
 0x117   : > { %s2679_s26 = scalar_lea.vmem %s512_s22, 16  ;;  %s2686_s20 = scalar_lea.vmem %s512_s22, 32 }
 0x118   : > { %p2680_p0 = scmp.ne.s32.totalorder %s512_s22, %s2679_s26  ;;  %p2687_p7 = scmp.lt.s32.totalorder %s512_s22, %s512_s22 }
 0x119   : > { %p2688_p9 = scmp.lt.s32.totalorder %s2686_s20, %s2679_s26 }
 0x11a   : > { %p2682_p2 = pnand %p2680_p0, %p3063_p8 }
 0x11b   : > { %p2689_p5 = por %p2688_p9, %p2687_p7 }
 0x11c   : > { %p2683_p4 = pneg %p2682_p2 }
 0x11e   : > { %p2690_p10 = pnand %p2689_p5, %p2683_p4 }
 0x120   : > { %2693 = shalt.err (!%p2690_p10)
}
 0x121   : > { %2231 = dma.hbm_to_vmem [thread:$0]  (!%p3047_p6), %s3645_s10, 16, %s512_s22, [#allocation23]  }
 0x122   : > { %s2905_s29 = smov [#allocation27]   ;;  %s2694_s13 = scalar_lea.hbm %s3647_s12, 16 }
 0x123   : > { %s533_s28 = sshll.u32 %s2905_s29, 4  ;;  %p2695_p1 = scmp.ne.s32.totalorder %s3647_s12, %s2694_s13  ;;  %s534_s28 = int_to_ptr.vmem [resolvable:$true] %s533_s28 }
 0x124   : > { %p2701_p12 = scmp.lt.u32.totalorder %s2694_s13, %s3647_s12 }
 0x125   : > { %p2697_p3 = pnand %p2695_p1, %p3063_p8 }
 0x127   : > { %p2698_p11 = pneg %p2697_p3 }
 0x129   : > { %p2703_p13 = pnand %p2701_p12, %p2698_p11 }
 0x12b   : > { %2706 = shalt.err (!%p2703_p13)
}
 0x12c   : > { %s2707_s22 = scalar_lea.vmem %s534_s28, 16  ;;  %s2714_s23 = scalar_lea.vmem %s534_s28, 32 }
 0x12d   : > { %p2708_p0 = scmp.ne.s32.totalorder %s534_s28, %s2707_s22  ;;  %p2715_p7 = scmp.lt.s32.totalorder %s534_s28, %s534_s28 }
 0x12e   : > { %p2716_p9 = scmp.lt.s32.totalorder %s2714_s23, %s2707_s22 }
 0x12f   : > { %p2710_p2 = pnand %p2708_p0, %p3063_p8 }
 0x130   : > { %p2717_p5 = por %p2716_p9, %p2715_p7 }
 0x131   : > { %p2711_p4 = pneg %p2710_p2 }
 0x133   : > { %p2718_p10 = pnand %p2717_p5, %p2711_p4 }
 0x135   : > { %2721 = shalt.err (!%p2718_p10)
}
 0x136   : > { %s3687_s0 = sld [smem:[#allocation41_spill]]  ;;  %s3688_s21 = sld [smem:[#allocation40_spill]] }
 0x137   : > { %s3689_s1 = sld [smem:[#allocation43_spill]]  ;;  %s1922_s29 = sadd.s32 4294967294, %s2890_s18  }
 0x138   : > { %2237 = dma.hbm_to_vmem [thread:$0]  (!%p3047_p6), %s3647_s12, 16, %s534_s28, [#allocation26]  }
 0x139   : > { %s52_s27 = sadd.s32 1, %s2886_s17  ;;  %s59_s24 = sadd.s32 1, %s2878_s15 }
 0x13a   : > { %p54_p8 = scmp.ge.s32.totalorder %s52_s27, 2  ;;  %p67_p3 = scmp.eq.s32.totalorder %s2890_s18, 0 }
 0x13b   : > { %s3691_s13 = sadd.s32 4294967295, %s2890_s18   ;;  %p356_p7 = scmp.eq.s32.totalorder %s1922_s29, 1 }
 0x13c   : > { %p66_p1 = scmp.ne.s32.totalorder %s2878_s15, %s3687_s0  ;;  %s3719_s27 = smov (%p54_p8, %s52_s27), 0 }
 0x13d   : > { %p72_p12 = scmp.ne.s32.totalorder %s3687_s0, %s3688_s21  ;;  %s56_s28 = ssub.s32 %s2886_s17, %s3719_s27 }
 0x13e   : > { %p3308_p11 = por %p67_p3, %p66_p1  ;;  %p350_p6 = scmp.eq.s32.totalorder %s3691_s13, 1 }
 0x13f   : > { %p57_p13 = scmp.eq.s32.totalorder %s56_s28, 0  ;;  %p3692_p0 = scmp.ne.s32.totalorder %s3689_s1, 0 }
 0x140   : > { %p3324_p4 = por %p350_p6, %p66_p1  ;;  %p3331_p9 = por %p356_p7, %p72_p12 }
 0x141   : > { %p3320_p2 = por %p3692_p0, %p72_p12  ;;  %p2261_p5 = scmp.lt.s32.totalorder %s2890_s18, 2 }
 0x142   : > { %s3694_s30 = scalar_select %p3324_p4, 1, 0 }
 0x143   : > { %s3329_s25 = scalar_select %p57_p13, %s2878_s15, %s59_s24  }
 0x144   : > { %s3695_s14 = scalar_select %p3331_p9, 1, 0 }
 0x145   : > { %s544_s22 = sand.u32 1, %s2878_s15   ;;  %s1938_s23 = sshll.u32 %s2886_s17, 7 }
 0x146   : > { %s1937_s26 = sshll.u32 %s544_s22, 3  ;;  %s3696_s21 = sld [smem:[#allocation45_spill]] }
 0x147   : > { %s548_s29 = scalar_lea.vmem [#allocation7], %s1937_s26  ;;  %p3345_p10 = pnand %p2261_p5, %p3308_p11 }
 0x148   : > { %s555_s24 = sshll.u32 %s548_s29, 4  ;;  %s545_s13 = scalar_lea.sflag [#allocation8], %s544_s22  ;;  %s3349_s24 = int_to_ptr.vmem [resolvable:$true] %s555_s24 }
 0x149   : > { %p2724_p1 = pneg %p3345_p10 }
 0x14c   : > { %s3341_s1 = scalar_lea.hbm %s3696_s21, %s1938_s23  ;;  %s2727_s19 = scalar_lea.hbm %s3696_s21, 256 }
 0x14d   : > { %s2722_s2 = scalar_lea.hbm %s3341_s1, 128  ;;  %p2728_p11 = scmp.lt.u32.totalorder %s3341_s1, %s3696_s21 }
 0x14e   : > { %p2723_p8 = scmp.ne.s32.totalorder %s3341_s1, %s2722_s2  ;;  %p2729_p6 = scmp.lt.u32.totalorder %s2727_s19, %s2722_s2 }
 0x14f   : > { %p2731_p0 = scmp.lt.u32.totalorder %s2722_s2, %s3341_s1 }
 0x150   : > { %p2725_p3 = pnand %p2724_p1, %p2723_p8  ;;  %p2730_p13 = por %p2729_p6, %p2728_p11 }
 0x152   : > { %p2726_p12 = pneg %p2725_p3  ;;  %p2732_p7 = por %p2731_p0, %p2730_p13 }
 0x154   : > { %p2733_p5 = pnand %p2732_p7, %p2726_p12 }
 0x156   : > { %2736 = shalt.err (!%p2733_p5)
}
 0x157   : > { %s2737_s22 = scalar_lea.vmem %s3349_s24, 128  ;;  %s2906_s29 = smov [#allocation7]  }
 0x158   : > { %p2738_p8 = scmp.ne.s32.totalorder %s3349_s24, %s2737_s22  ;;  %s2742_s23 = sshll.u32 %s2906_s29, 4  ;;  %s2743_s23 = int_to_ptr.vmem [resolvable:$false] %s2742_s23 }
 0x159   : > { %s2744_s26 = scalar_lea.vmem %s2743_s23, 256  ;;  %p2745_p4 = scmp.lt.s32.totalorder %s3349_s24, %s2743_s23 }
 0x15a   : > { %p2740_p3 = pnand %p2738_p8, %p2724_p1  ;;  %p2746_p11 = scmp.lt.s32.totalorder %s2744_s26, %s2737_s22 }
 0x15c   : > { %p2741_p9 = pneg %p2740_p3  ;;  %p2747_p6 = por %p2746_p11, %p2745_p4 }
 0x15e   : > { %p2748_p13 = pnand %p2747_p6, %p2741_p9 }
 0x160   : > { %2751 = shalt.err (!%p2748_p13)
}
 0x161   : > { %2241 = dma.hbm_to_vmem [thread:$0]  (!%p3345_p10), %s3341_s1, 128, %s3349_s24, %s545_s13  }
 0x162   : > { %s3698_s2 = sld [smem:[#allocation44_spill]] }
 0x168   : > { %p3699_p12 = scmp.ne.s32.totalorder %s3698_s2, 0 }
 0x169   : > { %s3700_s19 = sld [smem:[#allocation41_spill]] (!%p3699_p12) }
 0x16a   : > { %564 = sbr.rel (%p3699_p12) target bundleno = 3041 (0xbe1), region = 72 }
 0x16f   : > { %s3379_s20 = sand.u32 (!%p3699_p12), 1, %s3700_s19  }
 0x170   : > { %s3665_s0 = sshll.u32 (!%p3699_p12), %s3379_s20, 3  ;;  %s567_s22 = scalar_lea.sflag (!%p3699_p12), [#allocation8], %s3379_s20 }
 0x171   : > { %s3385_s29 = scalar_lea.vmem [#allocation7], %s3665_s0 }
 0x172   : > { %2833 = dma.done.wait (%p3320_p2), %s567_s22, 128  }
 0x173   : > { %2835 = vsyncadd (%p3320_p2), %s567_s22, 4294967168  ;;  %s3701_s1 = sld [smem:[#allocation43_spill]] }
 0x179   : > { %p3702_p4 = scmp.ne.s32.totalorder %s3701_s1, 0 }
 0x17b   : > { %2837 = dma.done.wait (%p3702_p4), [#allocation11], 272  }
 0x17c   : > { %2839 = vsyncadd (%p3702_p4), [#allocation11], 4294967024 }
 0x17d   : > { %2841 = dma.done.wait (%p3702_p4), [#allocation14], 272  }
 0x17e   : > { %2843 = vsyncadd (%p3702_p4), [#allocation14], 4294967024 }
 0x17f   : > { %2845 = dma.done.wait (%p3702_p4), [#allocation17], 32  }
 0x180   : > { %2847 = vsyncadd (%p3702_p4), [#allocation17], 4294967264 }
 0x181   : > { %2849 = dma.done.wait (%p3702_p4), [#allocation20], 272  }
 0x182   : > { %2851 = vsyncadd (%p3702_p4), [#allocation20], 4294967024 }
 0x183   : > { %2853 = dma.done.wait (%p3702_p4), [#allocation23], 1040  }
 0x184   : > { %2855 = vsyncadd (%p3702_p4), [#allocation23], 4294966256 }
 0x185   : > { %2857 = dma.done.wait (%p3702_p4), [#allocation26], 32  }
 0x186   : > { %2859 = vsyncadd (%p3702_p4), [#allocation26], 4294967264  ;;  %vm704_vm0 = vcmask 261120   ;;  %v2907_v0 = vmov 0.0   ;;  %vm2908_vm1 = vmmov 0   ;;  %v2350_v1 = vld [vmem:[#allocation10] sm:$0xff]  }
 0x187   : > { %2047 = vmatprep.subr.bf16.mxu1 %v2907_v0  ;;  %2051 = vmatprep.mubr.msk.bf16.mxu1 %vm2908_vm1, %v2907_v0  ;;  %1441 = vst.msk [vmem:[#allocation6] sm:$0xff] %vm704_vm0, %v2907_v0  ;;  %s2909_s16 = smov 96   ;;  %v2351_v2 = vld [vmem:[#allocation10 + $0x8] sm:$0xff]   ;;  %v1955_v3 = vld [vmem:[#allocation12] ss:$0 sm:$0xff]  ;;  %v2352_v8 = vld [vmem:[#allocation10] sm:$0xff]  }
 0x188   : > { %2075 = vmatprep.subr.bf16.mxu0 %v2907_v0  ;;  %2077 = vmatprep.mubr.msk.bf16.mxu0 %vm2908_vm1, %v2907_v0  ;;  %v3427_v5 = vld [vmem:[%s3385_s29] sm:$0xff]  ;;  %v2353_v9 = vld [vmem:[#allocation10 + $0x8] sm:$0xff]   ;;  %vm749_vm2 = vcmask 60416   ;;  %s2910_s24 = smov 112   ;;  %s2911_s28 = smov 120   ;;  %vm887_vm3 = vcmask 64512  }
 0x189   : > { %695 = vrot.lane.b32.xlu0 %v2350_v1, %s2909_s16  ;;  %701 = vrot.lane.b32.xlu1 %v1955_v3, %s2909_s16  ;;  %v674_v7 = vpack.c.bf16 %v3427_v5, %v3427_v5  ;;  %s2912_s13 = smov 104   ;;  %s2913_s23 = smov 88   ;;  %vm1131_vm4 = vcmask 1043456   ;;  %vm1322_vm5 = vcmask 126016   ;;  %vm1331_vm6 = vcmask 191616  }
 0x18a   : > { %s2914_s26 = smov 80   ;;  %s2915_s2 = smov 72   ;;  %vm1340_vm7 = vcmask 257216  }
 0x18b   : > { %s1954_s19 = sshll.u32 %s3379_s20, 5  ;;  %s3666_s29 = smov 8  }
 0x18c   : > { %s3495_s22 = scalar_lea.vmem [#allocation29], %s1954_s19  ;;  %s2917_s1 = smov 24  }
 0x18d   : > { %697 = vrot.lane.b32.xlu0 %v2351_v2, %s2909_s16  ;;  %p3705_p9 = scmp.ne.s32.totalorder %s3694_s30, 0  ;;  %s2919_s0 = smov [#allocation29]  }
 0x1fb   : > { %v696_v4 = vpop.permute.xlu0 %695  ;;  %v702_v10 = vpop.permute.xlu1 %701 }
 0x1fc   : > { %2048 = vmatpush3.bf16.msra.mxu1 %v696_v4 }
 0x1fd   : > { %2049 = vmatprep.subr.bf16.mxu1 %v2907_v0 }
 0x1ff   : > { %v698_v6 = vpop.permute.xlu0 %697 }
 0x200   : > { %2050 = vmatpush3.bf16.msra.mxu1 %v698_v6 }
 0x201   : > { %2055 = vmatprep.subr.bf16.mxu1 %v2907_v0 }
 0x203   : > { %2052 = vmatmul.mubr.msk.bf16.vlgmr.msra.gmra.mrb[0].mxu1 %vm704_vm0, %v674_v7 }
 0x204   : > { %2056 = vmatpush3.bf16.msra.mxu1 %v2352_v8  ;;  %2059 = vmatprep.mubr.msk.bf16.mxu1 %vm2908_vm1, %v2907_v0 }
 0x205   : > { %2057 = vmatprep.subr.bf16.mxu1 %v2907_v0 }
 0x208   : > { %2058 = vmatpush3.bf16.msra.mxu1 %v2353_v9 }
 0x209   : > { %2063 = vmatprep.subr.bf16.mxu1 %v2907_v0 }
 0x20b   : > { %2060 = vmatmul.mubr.msk.bf16.vlgmr.msra.gmra.mrb[4].mxu1 %vm704_vm0, %v674_v7 }
 0x20c   : > { %2065 = vmatprep.mubr.msk.bf16.mxu1 %vm2908_vm1, %v2907_v0 }
 0x2d6   : > { %v742_v11 = vpop.f32.mrb[0].mxu1 }
 0x2d7   : > { %v743_v12 = vadd.f32 %v742_v11, %v702_v10  ;;  %v2053_v13 = vpop.f32.mrb[1].mxu1 }
 0x2d8   : > { %v745_v14 = vpop.f32.mrb[2].mxu1 }
 0x2d9   : > { %v3441_v15 = vpack.c.bf16 %v743_v12, %v743_v12  ;;  %v2054_v16 = vpop.f32.mrb[3].mxu1 }
 0x2db   : > { %750 = vst.msk [vmem:[#allocation3] sm:$0xf] %vm749_vm2, %v3441_v15  ;;  %768 = vrot.lane.b32.xlu0 %v3441_v15, %s2910_s24  ;;  %758 = vrot.lane.b32.xlu1 %v3441_v15, %s2911_s28 }
 0x2de   : > { %v851_v17 = vpop.f32.mrb[4].mxu1 }
 0x2df   : > { %v852_v18 = vadd.f32 %v1955_v3, %v851_v17  ;;  %778 = vrot.lane.b32.xlu1 %v3441_v15, %s2912_s13  ;;  %v2061_v19 = vpop.f32.mrb[5].mxu1 }
 0x2e0   : > { %v854_v20 = vpop.f32.mrb[6].mxu1 }
 0x2e1   : > { %v857_v21 = vmul.f32 0.35355338, %v852_v18  ;;  %v2062_v22 = vpop.f32.mrb[7].mxu1 }
 0x2e2   : > { %v883_v23 = vld [vmem:[#allocation3] sm:$0xf] }
 0x2e3   : > { %v858_v24 = vpack.c.bf16 %v857_v21, %v857_v21  ;;  %v892_v25 = vsel %vm887_vm3, %v883_v23, 0 }
 0x2e4   : > { %2064 = vmatpush3.bf16.xpose.msra.mxu1 %v892_v25 }
 0x2e5   : > { %860 = vst.msk [vmem:[#allocation2] sm:$0xf] %vm749_vm2, %v858_v24  ;;  %869 = vrot.lane.b32.xlu1 %v858_v24, %s2910_s24  ;;  %864 = vrot.lane.b32.xlu0 %v858_v24, %s2911_s28  ;;  %s3703_s24 = sld [smem:[#allocation42_spill]] }
 0x2e6   : > { %2069 = vmatprep.subr.bf16.mxu1 %v2907_v0 }
 0x2e9   : > { %874 = vrot.lane.b32.xlu0 %v858_v24, %s2912_s13  ;;  %s1691_s13 = sshll.u32 %s3495_s22, 4  ;;  %s3552_s13 = int_to_ptr.vmem [resolvable:$true] %s1691_s13 }
 0x2eb   : > { %s2009_s28 = sshll.u32 %s3703_s24, 9 }
 0x2ec   : > { %v879_v26 = vld [vmem:[#allocation2] sm:$0xf] }
 0x2ed   : > { %2066 = vmatmul.mubr.msk.bf16.vlgmr.msra.gmra.mrb[8].mxu1 %vm887_vm3, %v879_v26 }
 0x2ee   : > { %2071 = vmatprep.mubr.msk.bf16.mxu1 %vm2908_vm1, %v2907_v0 }
 0x34d   : > { %v769_v27 = vpop.permute.xlu0 %768  ;;  %v759_v28 = vpop.permute.xlu1 %758 }
 0x34e   : > { %772 = vst.msk [vmem:[#allocation3 + $0x8] sm:$0xf] %vm749_vm2, %v769_v27  ;;  %762 = vst.msk [vmem:[#allocation3 + $0x4] sm:$0xf] %vm749_vm2, %v759_v28 }
 0x351   : > { %v779_v29 = vpop.permute.xlu1 %778 }
 0x352   : > { %782 = vst.msk [vmem:[#allocation3 + $0xc] sm:$0xf] %vm749_vm2, %v779_v29 }
 0x355   : > { %v885_v30 = vld [vmem:[#allocation3 + $0x8] sm:$0xf]  ;;  %v884_v31 = vld [vmem:[#allocation3 + $0x4] sm:$0xf] }
 0x356   : > { %v984_v32 = vsel %vm887_vm3, %v885_v30, 0  ;;  %v938_v33 = vsel %vm887_vm3, %v884_v31, 0 }
 0x357   : > { %2076 = vmatpush3.bf16.xpose.msra.mxu0 %v984_v32  ;;  %v870_v34 = vpop.permute.xlu1 %869  ;;  %v865_v35 = vpop.permute.xlu0 %864  ;;  %2070 = vmatpush3.bf16.xpose.msra.mxu1 %v938_v33 }
 0x358   : > { %873 = vst.msk [vmem:[#allocation2 + $0x8] sm:$0xf] %vm749_vm2, %v870_v34  ;;  %868 = vst.msk [vmem:[#allocation2 + $0x4] sm:$0xf] %vm749_vm2, %v865_v35  ;;  %2081 = vmatprep.subr.bf16.mxu1 %v2907_v0  ;;  %2087 = vmatprep.subr.bf16.mxu0 %v2907_v0 }
 0x359   : > { %v886_v37 = vld [vmem:[#allocation3 + $0xc] sm:$0xf] }
 0x35a   : > { %v1030_v40 = vsel %vm887_vm3, %v886_v37, 0 }
 0x35b   : > { %v875_v36 = vpop.permute.xlu0 %874 }
 0x35c   : > { %878 = vst.msk [vmem:[#allocation2 + $0xc] sm:$0xf] %vm749_vm2, %v875_v36 }
 0x35f   : > { %v880_v38 = vld [vmem:[#allocation2 + $0x4] sm:$0xf]  ;;  %v881_v39 = vld [vmem:[#allocation2 + $0x8] sm:$0xf] }
 0x360   : > { %2072 = vmatmul.mubr.msk.bf16.vlgmr.msra.gmra.mrb[12].mxu1 %vm887_vm3, %v880_v38  ;;  %2078 = vmatmul.mubr.msk.bf16.vlgmr.msra.gmra.mrb[0].mxu0 %vm887_vm3, %v881_v39 }
 0x361   : > { %2082 = vmatpush3.bf16.xpose.msra.mxu1 %v1030_v40  ;;  %2083 = vmatprep.mubr.msk.bf16.mxu1 %vm2908_vm1, %v2907_v0 }
 0x362   : > { %2093 = vmatprep.subr.bf16.mxu1 %v2907_v0  ;;  %2089 = vmatprep.mubr.msk.bf16.mxu0 %vm2908_vm1, %v2907_v0 }
 0x363   : > { %v882_v41 = vld [vmem:[#allocation2 + $0xc] sm:$0xf] }
 0x368   : > { %2084 = vmatmul.mubr.msk.bf16.vlgmr.msra.gmra.mrb[16].mxu1 %vm887_vm3, %v882_v41 }
 0x369   : > { %2095 = vmatprep.mubr.msk.bf16.mxu1 %vm2908_vm1, %v2907_v0 }
 0x3c0   : > { %v928_v42 = vpop.f32.mrb[8].mxu1 }
 0x3c1   : > { %v2067_v43 = vpop.f32.mrb[9].mxu1  ;;  %v1072_v44 = vsel %vm887_vm3, %v928_v42, -inf }
 0x3c2   : > { %1073 = vmax.xlane.f32.xlu1 %v1072_v44  ;;  %v931_v45 = vpop.f32.mrb[10].mxu1 }
 0x3c3   : > { %v2068_v46 = vpop.f32.mrb[11].mxu1 }
 0x433   : > { %v974_v47 = vpop.f32.mrb[12].mxu1  ;;  %v1020_v48 = vpop.f32.mrb[0].mxu0 }
 0x434   : > { %v2073_v49 = vpop.f32.mrb[13].mxu1  ;;  %v2079_v50 = vpop.f32.mrb[1].mxu0  ;;  %v1075_v51 = vsel %vm887_vm3, %v974_v47, -inf  ;;  %v1078_v56 = vsel %vm887_vm3, %v1020_v48, -inf }
 0x435   : > { %v1023_v52 = vpop.f32.mrb[2].mxu0  ;;  %1076 = vmax.xlane.f32.xlu0 %v1075_v51  ;;  %v977_v53 = vpop.f32.mrb[14].mxu1 }
 0x436   : > { %v2074_v54 = vpop.f32.mrb[15].mxu1  ;;  %v2080_v55 = vpop.f32.mrb[3].mxu0 }
 0x437   : > { %v2354_v54 = vld [vmem:[#allocation13] sm:$0xff]  }
 0x439   : > { %1079 = vmax.xlane.f32.xlu0 %v1078_v56 }
 0x43b   : > { %v1066_v57 = vpop.f32.mrb[16].mxu1 }
 0x43c   : > { %v2085_v58 = vpop.f32.mrb[17].mxu1  ;;  %v1081_v59 = vsel %vm887_vm3, %v1066_v57, -inf }
 0x43d   : > { %1082 = vmax.xlane.f32.xlu1 %v1081_v59  ;;  %v1069_v60 = vpop.f32.mrb[18].mxu1  ;;  %v2355_v58 = vld [vmem:[#allocation13 + $0x8] sm:$0xff]  }
 0x43e   : > { %v2086_v61 = vpop.f32.mrb[19].mxu1 }
 0x44e   : > { %763 = vrot.lane.b32.xlu1 %v3441_v15, %s2913_s23 }
 0x44f   : > { %754 = vrot.lane.b32.xlu0 %v3441_v15, %s2909_s16  ;;  %v1074_v62 = vpop.xlane.xlu1 %1073  ;;  %s2918_s16 = smov 16  }
 0x450   : > { %v1084_v63 = vsub.f32 %v928_v42, %v1074_v62 }
 0x452   : > { %v1088_v1 = vmul.f32 1.442695, %v1084_v63 }
 0x454   : > { %2366 = vpow2.f32 %v1088_v1 }
 0x45e   : > { %v2367_v2 = vpop.eup %2366 }
 0x45f   : > { %v1096_v3 = vsel %vm887_vm3, %v2367_v2, 0.0 }
 0x46e   : > { %1097 = vadd.xlane.f32.xlu0 %v1096_v3 }
 0x4c2   : > { %v1077_v4 = vpop.xlane.xlu0 %1076 }
 0x4c3   : > { %v1085_v6 = vsub.f32 %v974_v47, %v1077_v4 }
 0x4c5   : > { %v1090_v7 = vmul.f32 1.442695, %v1085_v6 }
 0x4c6   : > { %v1080_v8 = vpop.xlane.xlu0 %1079 }
 0x4c7   : > { %2368 = vpow2.f32 %v1090_v7  ;;  %v1086_v9 = vsub.f32 %v1020_v48, %v1080_v8 }
 0x4c9   : > { %v1092_v10 = vmul.f32 1.442695, %v1086_v9 }
 0x4ca   : > { %v755_v11 = vpop.permute.xlu0 %754  ;;  %v1083_v12 = vpop.xlane.xlu1 %1082 }
 0x4cb   : > { %2370 = vpow2.f32 %v1092_v10  ;;  %757 = vst.msk [vmem:[#allocation4] sm:$0xf] %vm749_vm2, %v755_v11  ;;  %v1087_v13 = vsub.f32 %v1066_v57, %v1083_v12  ;;  %v1976_v12 = vld [vmem:[#allocation15] ss:$0 sm:$0xff] }
 0x4cd   : > { %v1094_v14 = vmul.f32 1.442695, %v1087_v13 }
 0x4ce   : > { %v764_v16 = vpop.permute.xlu1 %763 }
 0x4cf   : > { %2372 = vpow2.f32 %v1094_v14  ;;  %767 = vst.msk [vmem:[#allocation4 + $0x4] sm:$0xf] %vm749_vm2, %v764_v16 }
 0x4d1   : > { %v2369_v17 = vpop.eup %2368 }
 0x4d2   : > { %v1099_v18 = vsel %vm887_vm3, %v2369_v17, 0.0  ;;  %v1124_v19 = vld [vmem:[#allocation4] sm:$0xf] }
 0x4d3   : > { %1100 = vadd.xlane.f32.xlu1 %v1099_v18  ;;  %v1133_v20 = vsel %vm1131_vm4, %v1124_v19, 0 }
 0x4d4   : > { %2088 = vmatpush3.bf16.msra.mxu0 %v1133_v20 }
 0x4d5   : > { %v2371_v21 = vpop.eup %2370  ;;  %2099 = vmatprep.subr.bf16.mxu0 %v2907_v0 }
 0x4d6   : > { %v1102_v22 = vsel %vm887_vm3, %v2371_v21, 0.0  ;;  %v1125_v23 = vld [vmem:[#allocation4 + $0x4] sm:$0xf] }
 0x4d7   : > { %1103 = vadd.xlane.f32.xlu0 %v1102_v22  ;;  %v1179_v24 = vsel %vm1131_vm4, %v1125_v23, 0 }
 0x4d8   : > { %2094 = vmatpush3.bf16.msra.mxu1 %v1179_v24 }
 0x4d9   : > { %v2373_v25 = vpop.eup %2372  ;;  %2105 = vmatprep.subr.bf16.mxu1 %v2907_v0 }
 0x4da   : > { %v1105_v26 = vsel %vm887_vm3, %v2373_v25, 0.0 }
 0x4db   : > { %1106 = vadd.xlane.f32.xlu1 %v1105_v26  ;;  %v2356_v26 = vld [vmem:[#allocation19] sm:$0xff]  }
 0x4ec   : > { %773 = vrot.lane.b32.xlu1 %v3441_v15, %s2914_s26 }
 0x4ed   : > { %783 = vrot.lane.b32.xlu0 %v3441_v15, %s2915_s2  ;;  %s3704_s2 = sld [smem:[#allocation50_spill]] }
 0x4f3   : > { %s3550_s19 = scalar_lea.hbm %s3704_s2, %s2009_s28 }
 0x4fb   : > { %v1098_v27 = vpop.xlane.xlu0 %1097 }
 0x4fc   : > { %2374 = vrcp.f32 %v1098_v27  ;;  %v2357_v27 = vld [vmem:[#allocation19 + $0x8] sm:$0xff]  }
 0x506   : > { %v2375_v28 = vpop.eup %2374 }
 0x507   : > { %v1109_v29 = vmul.f32 %v2375_v28, %v2367_v2  ;;  %v2358_v28 = vld [vmem:[#allocation22] sm:$0xff]  }
 0x509   : > { %1116 = vst.msk [vmem:[%s3495_s22] sm:$0xff] %vm887_vm3, %v1109_v29  ;;  %v1120_v30 = vpack.c.bf16 %v1109_v29, %v1109_v29  ;;  %v2359_v29 = vld [vmem:[#allocation22 + $0x8] sm:$0xff]  }
 0x50b   : > { %2090 = vmatmul.mubr.msk.bf16.vlgmr.msra.gmra.mrb[4].mxu0 %vm887_vm3, %v1120_v30  ;;  %v2361_v30 = vld [vmem:[#allocation22 + $0x18] sm:$0xff]  }
 0x50c   : > { %2101 = vmatprep.mubr.msk.bf16.mxu0 %vm2908_vm1, %v2907_v0 }
 0x560   : > { %v1101_v31 = vpop.xlane.xlu1 %1100 }
 0x561   : > { %2376 = vrcp.f32 %v1101_v31  ;;  %v2362_v31 = vld [vmem:[#allocation22 + $0x20] sm:$0xff]  }
 0x564   : > { %v1104_v15 = vpop.xlane.xlu0 %1103 }
 0x565   : > { %2378 = vrcp.f32 %v1104_v15  ;;  %v2363_v15 = vld [vmem:[#allocation22 + $0x28] sm:$0xff]  }
 0x568   : > { %v784_v32 = vpop.permute.xlu0 %783  ;;  %v1107_v33 = vpop.xlane.xlu1 %1106 }
 0x569   : > { %787 = vst.msk [vmem:[#allocation4 + $0xc] sm:$0xf] %vm749_vm2, %v784_v32  ;;  %2380 = vrcp.f32 %v1107_v33 }
 0x56b   : > { %v2377_v34 = vpop.eup %2376 }
 0x56c   : > { %v1111_v35 = vmul.f32 %v2377_v34, %v2369_v17  ;;  %v774_v36 = vpop.permute.xlu1 %773 }
 0x56d   : > { %777 = vst.msk [vmem:[#allocation4 + $0x8] sm:$0xf] %vm749_vm2, %v774_v36  ;;  %v1980_v36 = vld [vmem:[#allocation16] ss:$0 sm:$0xff] }
 0x56e   : > { %1117 = vst.msk [vmem:[%s3495_s22 + $0x8] sm:$0xff] %vm887_vm3, %v1111_v35  ;;  %v1121_v37 = vpack.c.bf16 %v1111_v35, %v1111_v35 }
 0x56f   : > { %v2379_v38 = vpop.eup %2378 }
 0x570   : > { %v1113_v39 = vmul.f32 %v2379_v38, %v2371_v21  ;;  %2096 = vmatmul.mubr.msk.bf16.vlgmr.msra.gmra.mrb[20].mxu1 %vm887_vm3, %v1121_v37  ;;  %v1127_v40 = vld [vmem:[#allocation4 + $0xc] sm:$0xf]  ;;  %v1981_v38 = vld [vmem:[#allocation18] ss:$0 sm:$0xff] }
 0x571   : > { %v1271_v41 = vsel %vm1131_vm4, %v1127_v40, 0  ;;  %2107 = vmatprep.mubr.msk.bf16.mxu1 %vm2908_vm1, %v2907_v0 }
 0x572   : > { %1118 = vst.msk [vmem:[%s3495_s22 + $0x10] sm:$0xff] %vm887_vm3, %v1113_v39  ;;  %2106 = vmatpush3.bf16.msra.mxu1 %v1271_v41  ;;  %v1122_v47 = vpack.c.bf16 %v1113_v39, %v1113_v39 }
 0x573   : > { %v2381_v42 = vpop.eup %2380  ;;  %2119 = vmatprep.subr.bf16.mxu1 %v2907_v0 }
 0x574   : > { %v1115_v43 = vmul.f32 %v2381_v42, %v2373_v25  ;;  %v1126_v44 = vld [vmem:[#allocation4 + $0x8] sm:$0xf]  ;;  %v2364_v42 = vld [vmem:[#allocation22 + $0x30] sm:$0xff]  }
 0x575   : > { %v1225_v45 = vsel %vm1131_vm4, %v1126_v44, 0  ;;  %v1982_v44 = vld [vmem:[#allocation21] ss:$0 sm:$0xff] }
 0x576   : > { %1119 = vst.msk [vmem:[%s3495_s22 + $0x18] sm:$0xff] %vm887_vm3, %v1115_v43  ;;  %2100 = vmatpush3.bf16.msra.mxu0 %v1225_v45  ;;  %v1123_v46 = vpack.c.bf16 %v1115_v43, %v1115_v43  ;;  %v2365_v43 = vld [vmem:[#allocation22 + $0x38] sm:$0xff]  }
 0x577   : > { %2111 = vmatprep.subr.bf16.mxu0 %v2907_v0 }
 0x578   : > { %2108 = vmatmul.mubr.msk.bf16.vlgmr.msra.gmra.mrb[24].mxu1 %vm887_vm3, %v1123_v46 }
 0x579   : > { %2102 = vmatmul.mubr.msk.bf16.vlgmr.msra.gmra.mrb[8].mxu0 %vm887_vm3, %v1122_v47  ;;  %2123 = vmatprep.mubr.msk.bf16.mxu1 %vm2908_vm1, %v2907_v0 }
 0x57a   : > { %2115 = vmatprep.mubr.msk.bf16.mxu0 %vm2908_vm1, %v2907_v0  ;;  %2112 = vmatpush3.bf16.msra.mxu0 %v2354_v54 }
 0x57b   : > { %2113 = vmatprep.subr.bf16.mxu0 %v2907_v0  ;;  %2120 = vmatpush3.bf16.msra.mxu1 %v2356_v26 }
 0x57c   : > { %2121 = vmatprep.subr.bf16.mxu1 %v2907_v0 }
 0x57e   : > { %2114 = vmatpush3.bf16.msra.mxu0 %v2355_v58 }
 0x57f   : > { %2127 = vmatprep.subr.bf16.mxu0 %v2907_v0  ;;  %2122 = vmatpush3.bf16.msra.mxu1 %v2357_v27 }
 0x5de   : > { %v1169_v48 = vpop.f32.mrb[4].mxu0 }
 0x5df   : > { %v1313_v49 = vpack.c.bf16 %v1169_v48, %v1169_v48  ;;  %v2091_v50 = vpop.f32.mrb[5].mxu0 }
 0x5e0   : > { %v1172_v51 = vpop.f32.mrb[6].mxu0 }
 0x5e1   : > { %1314 = vst.msk [vmem:[#allocation5] sm:$0xf] %vm749_vm2, %v1313_v49  ;;  %v2092_v52 = vpop.f32.mrb[7].mxu0 }
 0x5e2   : > { %v1509_v52 = vld [vmem:[#allocation6] sm:$0xff] }
 0x643   : > { %v1215_v53 = vpop.f32.mrb[20].mxu1 }
 0x644   : > { %v2006_v55 = vpack.c.bf16 %v1215_v53, %v1215_v53  ;;  %v2097_v56 = vpop.f32.mrb[21].mxu1 }
 0x645   : > { %v1218_v57 = vpop.f32.mrb[22].mxu1 }
 0x646   : > { %1319 = vrot.lane.b32.xlu1 %v2006_v55, %s3666_s29  ;;  %v2098_v59 = vpop.f32.mrb[23].mxu1  ;;  %v1994_v57 = vld [vmem:[#allocation24] ss:$0 sm:$0xff]  ;;  %s2756_s29 = sshll.u32 %s2919_s0, 4  ;;  %s2757_s29 = int_to_ptr.vmem [resolvable:$false] %s2756_s29 }
 0x647   : > { %s2758_s22 = scalar_lea.vmem %s2757_s29, 1024  ;;  %p2759_p0 = scmp.lt.s32.totalorder %s3552_s13, %s2757_s29 }
 0x64b   : > { %v1307_v60 = vpop.f32.mrb[24].mxu1 }
 0x64c   : > { %v2008_v61 = vpack.c.bf16 %v1307_v60, %v1307_v60  ;;  %v1261_v62 = vpop.f32.mrb[8].mxu0  ;;  %v2109_v63 = vpop.f32.mrb[25].mxu1 }
 0x64d   : > { %v2007_v1 = vpack.c.bf16 %v1261_v62, %v1261_v62  ;;  %v2103_v2 = vpop.f32.mrb[9].mxu0  ;;  %v1310_v3 = vpop.f32.mrb[26].mxu1 }
 0x64e   : > { %v1264_v4 = vpop.f32.mrb[10].mxu0  ;;  %1337 = vrot.lane.b32.xlu1 %v2008_v61, %s2917_s1  ;;  %v2110_v6 = vpop.f32.mrb[27].mxu1 }
 0x64f   : > { %1328 = vrot.lane.b32.xlu0 %v2007_v1, %s2918_s16  ;;  %v2104_v7 = vpop.f32.mrb[11].mxu0  ;;  %s2752_s16 = scalar_lea.vmem %s3552_s13, 512 }
 0x650   : > { %p2753_p2 = scmp.ne.s32.totalorder %s3552_s13, %s2752_s16  ;;  %p2760_p7 = scmp.lt.s32.totalorder %s2758_s22, %s2752_s16 }
 0x652   : > { %p2754_p10 = pnand %p2753_p2, %p3705_p9  ;;  %p2761_p5 = por %p2760_p7, %p2759_p0 }
 0x654   : > { %p2755_p1 = pneg %p2754_p10 }
 0x656   : > { %p2762_p8 = pnand %p2761_p5, %p2755_p1 }
 0x6b8   : > { %v1320_v8 = vpop.permute.xlu1 %1319 }
 0x6b9   : > { %1323 = vst.msk [vmem:[#allocation5] sm:$0xf] %vm1322_vm5, %v1320_v8 }
 0x6c0   : > { %v1338_v10 = vpop.permute.xlu1 %1337 }
 0x6c1   : > { %v1329_v9 = vpop.permute.xlu0 %1328 }
 0x6c2   : > { %1332 = vst.msk [vmem:[#allocation5] sm:$0xf] %vm1331_vm6, %v1329_v9 }
 0x6c3   : > { %1341 = vst.msk [vmem:[#allocation5] sm:$0xf] %vm1340_vm7, %v1338_v10 }
 0x6ca   : > { %v1342_v11 = vld [vmem:[#allocation5] sm:$0xf] }
 0x6cb   : > { %2116 = vmatmul.mubr.msk.bf16.vlgmr.msra.gmra.mrb[12].mxu0 %vm704_vm0, %v1342_v11 }
 0x6cc   : > { %2143 = vmatprep.mubr.msk.bf16.mxu0 %vm2908_vm1, %v2907_v0  ;;  %2128 = vmatpush3.bf16.msra.mxu0 %v2358_v28 }
 0x6cd   : > { %2129 = vmatprep.subr.bf16.mxu0 %v2907_v0 }
 0x6d0   : > { %2130 = vmatpush3.bf16.msra.mxu0 %v2359_v29 }
 0x6d1   : > { %2131 = vmatprep.subr.bf16.mxu0 %v2907_v0 }
 0x79e   : > { %v1403_v13 = vpop.f32.mrb[12].mxu0 }
 0x79f   : > { %v1404_v14 = vadd.f32 %v1976_v12, %v1403_v13  ;;  %v2117_v16 = vpop.f32.mrb[13].mxu0 }
 0x7a0   : > { %v1406_v17 = vpop.f32.mrb[14].mxu0 }
 0x7a1   : > { %v2118_v18 = vpop.f32.mrb[15].mxu0  ;;  %v1409_v19 = vadd.f32 %v1404_v14, %v3427_v5  ;;  %v2360_v5 = vld [vmem:[#allocation22 + $0x10] sm:$0xff]  }
 0x7a2   : > { %2132 = vmatpush3.bf16.msra.mxu0 %v2360_v5 }
 0x7a3   : > { %v1412_v20 = vsel %vm704_vm0, %v1409_v19, 0.0  ;;  %2133 = vmatprep.subr.bf16.mxu0 %v2907_v0 }
 0x7a4   : > { %1413 = vadd.xlane.f32.xlu0 %v1412_v20 }
 0x7a6   : > { %2134 = vmatpush3.bf16.msra.mxu0 %v2361_v30 }
 0x7a7   : > { %2135 = vmatprep.subr.bf16.mxu0 %v2907_v0 }
 0x7aa   : > { %2136 = vmatpush3.bf16.msra.mxu0 %v2362_v31 }
 0x7ab   : > { %2137 = vmatprep.subr.bf16.mxu0 %v2907_v0 }
 0x7ae   : > { %2138 = vmatpush3.bf16.msra.mxu0 %v2363_v15 }
 0x7af   : > { %2139 = vmatprep.subr.bf16.mxu0 %v2907_v0 }
 0x7b2   : > { %2140 = vmatpush3.bf16.msra.mxu0 %v2364_v42 }
 0x7b3   : > { %2141 = vmatprep.subr.bf16.mxu0 %v2907_v0 }
 0x7b6   : > { %2142 = vmatpush3.bf16.msra.mxu0 %v2365_v43 }
 0x831   : > { %v1414_v21 = vpop.xlane.xlu0 %1413 }
 0x832   : > { %v1416_v22 = vmul.f32 0.03125, %v1414_v21 }
 0x834   : > { %v1417_v23 = vsub.f32 %v1409_v19, %v1416_v22 }
 0x836   : > { %v1418_v24 = vmul.f32 %v1417_v23, %v1417_v23 }
 0x838   : > { %v1419_v25 = vsel %vm704_vm0, %v1418_v24, 0.0 }
 0x839   : > { %1420 = vadd.xlane.f32.xlu1 %v1419_v25 }
 0x8c6   : > { %v1421_v32 = vpop.xlane.xlu1 %1420 }
 0x8c7   : > { %v1422_v33 = vmul.f32 0.03125, %v1421_v32 }
 0x8c9   : > { %v1423_v34 = vadd.f32 1e-06, %v1422_v33 }
 0x8cb   : > { %2382 = vrsqrt.f32 %v1423_v34 }
 0x8d5   : > { %v2383_v35 = vpop.eup %2382 }
 0x8d6   : > { %v1425_v37 = vmul.f32 %v2383_v35, %v1417_v23 }
 0x8d8   : > { %v1432_v39 = vmul.f32 %v1980_v36, %v1425_v37 }
 0x8da   : > { %v1439_v40 = vadd.f32 %v1981_v38, %v1432_v39 }
 0x8dc   : > { %v1440_v41 = vpack.c.bf16 %v1439_v40, %v1439_v40 }
 0x8de   : > { %2124 = vmatmul.mubr.msk.bf16.vlgmr.msra.gmra.mrb[28].mxu1 %vm704_vm0, %v1440_v41 }
 0x9b1   : > { %v1502_v45 = vpop.f32.mrb[28].mxu1 }
 0x9b2   : > { %v1503_v46 = vadd.f32 %v1982_v44, %v1502_v45  ;;  %v2125_v47 = vpop.f32.mrb[29].mxu1 }
 0x9b3   : > { %v1505_v48 = vpop.f32.mrb[30].mxu1 }
 0x9b4   : > { %v1508_v49 = vmax.f32 %v1503_v46, 0.0  ;;  %v2126_v50 = vpop.f32.mrb[31].mxu1 }
 0x9b6   : > { %v1510_v51 = vpack.c.bf16 %v1508_v49, %v1508_v49 }
 0x9b8   : > { %2144 = vmatmul.mubr.bf16.vlgmr.msra.gmra.mrb[16].mxu0 %v1510_v51 }
 0xa8b   : > { %v1609_v53 = vpop.f32.mrb[16].mxu0 }
 0xa8c   : > { %v1615_v54 = vadd.f32 %v1609_v53, %v1509_v52  ;;  %v2145_v55 = vpop.f32.mrb[17].mxu0 }
 0xa8d   : > { %v1612_v56 = vpop.f32.mrb[18].mxu0 }
 0xa8e   : > { %1616 = vst.msk [vmem:[#allocation6] sm:$0xff] %vm704_vm0, %v1615_v54  ;;  %v2146_v0 = vpop.f32.mrb[19].mxu0 }
 0xa95   : > { %v1617_v58 = vld [vmem:[#allocation6] sm:$0xff] }
 0xa96   : > { %v1625_v59 = vadd.f32 %v1994_v57, %v1617_v58 }
 0xa98   : > { %v1626_v60 = vadd.f32 %v1625_v59, %v1439_v40 }
 0xa9a   : > { %v1629_v61 = vsel %vm704_vm0, %v1626_v60, 0.0 }
 0xa9b   : > { %1630 = vadd.xlane.f32.xlu0 %v1629_v61 }
 0xb28   : > { %v1631_v62 = vpop.xlane.xlu0 %1630 }
 0xb29   : > { %v1632_v63 = vmul.f32 0.03125, %v1631_v62 }
 0xb2b   : > { %v1633_v1 = vsub.f32 %v1626_v60, %v1632_v63 }
 0xb2d   : > { %v1634_v2 = vmul.f32 %v1633_v1, %v1633_v1 }
 0xb2f   : > { %v1635_v3 = vsel %vm704_vm0, %v1634_v2, 0.0 }
 0xb30   : > { %1636 = vadd.xlane.f32.xlu0 %v1635_v3 }
 0xb31   : > { %2765 = shalt.err (!%p2762_p8)
}
 0xb32   : > { %s2766_s28 = scalar_lea.hbm %s3550_s19, 512  ;;  %s2770_s0 = scalar_lea.hbm %s3704_s2, 1024 }
 0xb33   : > { %p2767_p3 = scmp.ne.s32.totalorder %s3550_s19, %s2766_s28  ;;  %p2771_p13 = scmp.lt.u32.totalorder %s3550_s19, %s3704_s2 }
 0xb34   : > { %p2772_p12 = scmp.lt.u32.totalorder %s2770_s0, %s2766_s28  ;;  %p2774_p2 = scmp.lt.u32.totalorder %s2766_s28, %s3550_s19 }
 0xb35   : > { %p2768_p11 = pnand %p2767_p3, %p3705_p9 }
 0xb36   : > { %p2773_p4 = por %p2772_p12, %p2771_p13 }
 0xb37   : > { %p2769_p6 = pneg %p2768_p11 }
 0xb38   : > { %p2775_p10 = por %p2774_p2, %p2773_p4 }
 0xb3a   : > { %p2776_p1 = pnand %p2775_p10, %p2769_p6 }
 0xb3c   : > { %2779 = shalt.err (!%p2776_p1)
}
 0xb3d   : > { %s2920_s16 = smov 128   ;;  %s3706_s22 = smov 8   ;;  %v1995_v9 = vld [vmem:[#allocation25] ss:$0 sm:$0xff]  ;;  %v1996_v11 = vld [vmem:[#allocation27] ss:$0 sm:$0xff] }
 0xb3e   : > { %s3707_s3 = scalar_lea.sflag [#allocation30], %s3379_s20  ;;  %s1999_s1 = sshll.u32 %s3703_s24, 7 }
 0xb3f   : > { %2198 = dma.vmem_to_hbm [thread:$0]  (%p3705_p9), %s3552_s13, 512, %s3550_s19, %s3707_s3, %s2920_s16, %s2920_s16, %s3706_s22  }
 0xb40   : > { %s3708_s28 = sshll.u32 %s3379_s20, 3  ;;  %s3709_s2 = sld [smem:[#allocation49_spill]] }
 0xb41   : > { %s660_s23 = scalar_lea.vmem [#allocation28], %s3708_s28  ;;  %s1658_s13 = scalar_lea.sflag [#allocation9], %s3379_s20 }
 0xb42   : > { %s1677_s26 = sshll.u32 %s660_s23, 4  ;;  %s2921_s24 = smov [#allocation28]   ;;  %s3587_s26 = int_to_ptr.vmem [resolvable:$true] %s1677_s26 }
 0xb43   : > { %s2780_s19 = scalar_lea.vmem %s3587_s26, 128  ;;  %s2784_s16 = sshll.u32 %s2921_s24, 4  ;;  %s2785_s16 = int_to_ptr.vmem [resolvable:$false] %s2784_s16 }
 0xb44   : > { %p2781_p0 = scmp.ne.s32.totalorder %s3587_s26, %s2780_s19  ;;  %s2786_s22 = scalar_lea.vmem %s2785_s16, 256 }
 0xb45   : > { %p2787_p8 = scmp.lt.s32.totalorder %s3587_s26, %s2785_s16  ;;  %p2788_p3 = scmp.lt.s32.totalorder %s2786_s22, %s2780_s19 }
 0xb46   : > { %s3585_s3 = scalar_lea.hbm %s3709_s2, %s1999_s1  ;;  %p2782_p7 = pnand %p2781_p0, %p3705_p9 }
 0xb47   : > { %p2789_p11 = por %p2788_p3, %p2787_p8 }
 0xb48   : > { %p2783_p5 = pneg %p2782_p7 }
 0xb4a   : > { %p2790_p6 = pnand %p2789_p11, %p2783_p5 }
 0xbbd   : > { %v1637_v4 = vpop.xlane.xlu0 %1636 }
 0xbbe   : > { %v1638_v6 = vmul.f32 0.03125, %v1637_v4 }
 0xbc0   : > { %v1639_v7 = vadd.f32 1e-06, %v1638_v6 }
 0xbc2   : > { %2384 = vrsqrt.f32 %v1639_v7 }
 0xbcc   : > { %v2385_v8 = vpop.eup %2384 }
 0xbcd   : > { %v1641_v10 = vmul.f32 %v2385_v8, %v1633_v1 }
 0xbcf   : > { %v1648_v12 = vmul.f32 %v1995_v9, %v1641_v10 }
 0xbd1   : > { %v1655_v13 = vadd.f32 %v1996_v11, %v1648_v12 }
 0xbd3   : > { %1656 = vst.msk [vmem:[%s660_s23] sm:$0xff] %vm704_vm0, %v1655_v13 }
 0xbd4   : > { %2793 = shalt.err (!%p2790_p6)
}
 0xbd5   : > { %s2794_s20 = scalar_lea.hbm %s3585_s3, 128  ;;  %s2798_s23 = scalar_lea.hbm %s3709_s2, 256 }
 0xbd6   : > { %p2795_p13 = scmp.ne.s32.totalorder %s3585_s3, %s2794_s20  ;;  %p2799_p2 = scmp.lt.u32.totalorder %s3585_s3, %s3709_s2 }
 0xbd7   : > { %p2800_p10 = scmp.lt.u32.totalorder %s2798_s23, %s2794_s20  ;;  %p2802_p0 = scmp.lt.u32.totalorder %s2794_s20, %s3585_s3 }
 0xbd8   : > { %p2796_p12 = pnand %p2795_p13, %p3705_p9 }
 0xbd9   : > { %p2801_p1 = por %p2800_p10, %p2799_p2 }
 0xbda   : > { %p2797_p4 = pneg %p2796_p12 }
 0xbdb   : > { %p2803_p7 = por %p2802_p0, %p2801_p1 }
 0xbdd   : > { %p2804_p5 = pnand %p2803_p7, %p2797_p4 }
 0xbdf   : > { %2807 = shalt.err (!%p2804_p5)
}
 0xbe0   : > { %2197 = dma.vmem_to_hbm [thread:$0]  (%p3705_p9), %s3587_s26, 128, %s3585_s3, %s1658_s13  }
 0xbe1 PF: > { %s3710_s19 = sld [smem:[#allocation40_spill]]  ;;  %p3711_p8 = scmp.ne.s32.totalorder %s3695_s14, 0 }
 0xbe2   : > { %p3712_p3 = scmp.ge.s32.totalorder %s2890_s18, 2 }
 0xbe4   : > { %p2243_p11 = pnand %p3712_p3, %p3711_p8 }
 0xbe7   : > { %s1706_s24 = sand.u32 1, %s3710_s19  }
 0xbe8   : > { %s1707_s16 = scalar_lea.sflag [#allocation9], %s1706_s24 }
 0xbe9   : > { %2861 = dma.done.wait (!%p2243_p11), %s1707_s16, 128  }
 0xbea   : > { %2863 = vsyncadd (!%p2243_p11), %s1707_s16, 4294967168  ;;  %s1716_s22 = scalar_lea.sflag [#allocation30], %s1706_s24 }
 0xbeb   : > { %2865 = dma.done.wait (!%p2243_p11), %s1716_s22, 512  }
 0xbec   : > { %2867 = vsyncadd (!%p2243_p11), %s1716_s22, 4294966784  ;;  %s40_s18 = sadd.s32 1, %s2890_s18   ;;  %s3713_s29 = sld [smem:[#allocation41_spill]] }
 0xbed   : > { %p37_p6 = scmp.ge.s32.totalorder %s40_s18, 4   ;;  %s3714_s30 = smov %s2878_s15 }
 0xbee   : > { %s3715_s15 = smov %s3329_s25  ;;  %s3716_s16 = smov %s2886_s17 }
 0xbef   : > { %s3717_s17 = smov %s3719_s27  ;;  %39 = sbr.rel (!%p37_p6) target bundleno = 21 (0x15), region = 195 }
 0xbf6   :  { %1721 = vsyncpa [#allocation8], 1 }
 0xbf7   :  { %1723 = vsyncpa [#allocation8 + $0x1], 1 }
 0xbf8   :  { %1724 = vsyncpa [#allocation11], 1 }
 0xbf9   :  { %1725 = vsyncpa [#allocation14], 1 }
 0xbfa   :  { %1726 = vsyncpa [#allocation17], 1 }
 0xbfb   :  { %1727 = vsyncpa [#allocation20], 1 }
 0xbfc   :  { %1728 = vsyncpa [#allocation23], 1 }
 0xbfd   :  { %1729 = vsyncpa [#allocation26], 1 }
 0xbfe   :  { %1730 = vsyncpa [#allocation9], 1 }
 0xbff   :  { %1732 = vsyncpa [#allocation9 + $0x1], 1 }
 0xc00   :  { %1733 = vsyncpa [#allocation30], 1 }
 0xc01   :  { %1735 = vsyncpa [#allocation30 + $0x1], 1 }

</bundles_post_ra>
